<compile_context>
chip_gen: v7x
topology: tpu7x:2x2x1
jax: 0.10.0
libtpu: 0.0.40
codegen_flags: <defaults>
</compile_context>

<pallas_src>
import jax
import jax.numpy as jnp
from jax import lax
from jax.experimental import pallas as pl
from jax.experimental.pallas import tpu as pltpu

IN_DIM = 2        # in_dim + 1  (the PINN feeds (x, t))
OUT_DIM = 1
HDIM = 20
N_LAYERS = 4
LANE = 128
PRIOR_SIG_W = 0.1 ** 2
PRIOR_SIG_B = 0.1
ROW_TILE = 1024   # rows per grid step; fits VMEM on v5e / v6e / v7x

# --- trig-free, prng-free N(0,1) generator (pure jnp -> lowers on Mosaic and
# --- runs under interpret mode) ----------------------------------------------
_GOLD = 0x9E3779B9
_MIX1 = 0x85EBCA6B
_MIX2 = 0xC2B2AE35
_MIX3 = 0x68E31DA4
_LAYER_SALT = 0x632BE5AB


def _fmix(x):
    """murmur3-style 32-bit finalizer on uint32 lanes."""
    x = x ^ (x >> 16)
    x = x * jnp.uint32(_MIX1)
    x = x ^ (x >> 13)
    x = x * jnp.uint32(_MIX2)
    x = x ^ (x >> 16)
    return x


def _bits_to_unit(bits_u32):
    """23 random bits -> float32 uniform in (0, 1)."""
    b = (bits_u32 >> 9).astype(jnp.int32).astype(jnp.float32)
    return b * (1.0 / (1 << 23)) + (0.5 / (1 << 23))


def _cos_2pi(t):
    """cos(2*pi*t) for t in [0,1): polynomial approximation (|err| < ~1e-3)."""
    x = t + 0.25
    x = x - jnp.floor(x + 0.5)                  # wrap to [-0.5, 0.5); cos(2pi t) = sin(2pi x)
    y = 8.0 * x - 16.0 * x * jnp.abs(x)         # parabolic sine
    return 0.225 * (y * jnp.abs(y) - y) + y     # one refinement step


def _std_normal(shape, seed_i32, row0_i32, layer):
    """N(0,1) noise keyed by (global row, lane, layer, per-call seed)."""
    rows = lax.broadcasted_iota(jnp.int32, shape, 0) + row0_i32
    cols = lax.broadcasted_iota(jnp.int32, shape, 1)
    salt = ((layer + 1) * _LAYER_SALT) & 0xFFFFFFFF
    base = (rows.astype(jnp.uint32) * jnp.uint32(_GOLD)) \
        ^ (cols.astype(jnp.uint32) * jnp.uint32(_MIX1)) \
        ^ seed_i32.astype(jnp.uint32) \
        ^ jnp.uint32(salt)
    b1 = _fmix(base)
    b2 = _fmix(b1 ^ jnp.uint32(_MIX3))
    u1 = _bits_to_unit(b1)
    u2 = _bits_to_unit(b2)
    r = jnp.sqrt(-2.0 * jnp.log(u1))            # Box-Muller radius
    return r * _cos_2pi(u2)


# --- kernel -------------------------------------------------------------------
def _bayes_mlp_kernel(seed_ref, x_ref, wmu_ref, wvar_ref, b_ref, o_ref):
    tm = x_ref.shape[0]
    seed = seed_ref[0]
    row0 = pl.program_id(0) * tm

    def sample_act(a_mu, a_var, layer):
        eps = _std_normal((tm, LANE), seed, row0, layer)
        return a_mu + jnp.sqrt(a_var) * eps + b_ref[layer]

    # Layer 1: K = IN_DIM = 2 -> lane broadcasts instead of a padded matmul,
    # which also avoids building a 128-lane-padded copy of x.
    x = x_ref[...]
    x0 = x[:, 0:1]
    x1 = x[:, 1:2]
    w1m = wmu_ref[0]
    w1v = wvar_ref[0]
    a_mu = x0 * w1m[0:1, :] + x1 * w1m[1:2, :]
    a_var = (x0 * x0) * w1v[0:1, :] + (x1 * x1) * w1v[1:2, :]
    h = jnp.tanh(sample_act(a_mu, a_var, 0))

    # Layers 2..4: (tm,128) @ (128,128) MXU matmuls, weights resident in VMEM.
    for layer in range(1, N_LAYERS):
        a_mu = jnp.dot(h, wmu_ref[layer], preferred_element_type=jnp.float32)
        a_var = jnp.dot(h * h, wvar_ref[layer], preferred_element_type=jnp.float32)
        a = sample_act(a_mu, a_var, layer)
        h = jnp.tanh(a) if layer < N_LAYERS - 1 else a

    o_ref[...] = h[:, 0:OUT_DIM]


# --- host-side wrapper ---------------------------------------------------------
def _pad_to(a, shape):
    out = jnp.zeros(shape, jnp.float32)
    return out.at[tuple(slice(0, s) for s in a.shape)].set(a.astype(jnp.float32))


def _kld_cost(mu_p, sig_p, mu_q, sig_q):
    return 0.5 * jnp.sum(2.0 * jnp.log(sig_p / sig_q) - 1.0
                         + (sig_q / sig_p) ** 2
                         + ((mu_p - mu_q) / sig_p) ** 2)


def _round_up(x, m):
    return ((x + m - 1) // m) * m


@jax.jit
def pinn_bbb_forward(xt, params, key):
    """PINN_BBB.forward(xt, use_sample=True) -> (u_xt, tlqw, tlpw)."""
    B, N, F = xt.shape
    assert F == IN_DIM
    M = B * N
    tm = min(ROW_TILE, _round_up(M, 8))
    n_tiles = pl.cdiv(M, tm)
    m_pad = n_tiles * tm

    k_seed, k_b = jax.random.split(key)
    kb = jax.random.split(k_b, N_LAYERS)

    # Parameter-only work (softplus stds, bias noise, KL) done in plain JAX.
    # TODO(synk): bit-exact reproduction of torch's RNG streams is not attempted.
    wmu_t, wvar_t, beff_t = [], [], []
    tlqw = jnp.float32(0.0)
    for l, p in enumerate(params):
        std_w = 1e-6 + jax.nn.softplus(p["W_p"])
        std_b = 1e-6 + jax.nn.softplus(p["b_p"])
        n_out = p["W_mu"].shape[1]
        eps_b = jax.random.normal(kb[l], (n_out,), jnp.float32)
        b_eff = p["b_mu"] + std_b * eps_b          # bias noise shared across the batch
        wmu_t.append(_pad_to(p["W_mu"], (LANE, LANE)))
        wvar_t.append(_pad_to(std_w * std_w, (LANE, LANE)))
        beff_t.append(_pad_to(b_eff[None, :], (1, LANE)))
        tlqw = tlqw + _kld_cost(0.0, PRIOR_SIG_W, p["W_mu"], std_w)
        tlqw = tlqw + _kld_cost(0.0, PRIOR_SIG_B, p["b_mu"], std_b)

    wmu = jnp.stack(wmu_t)      # (4, 128, 128)
    wvar = jnp.stack(wvar_t)    # (4, 128, 128)
    beff = jnp.stack(beff_t)    # (4, 1, 128)

    x2 = xt.reshape(M, F).astype(jnp.float32)
    if m_pad != M:
        x2 = _pad_to(x2, (m_pad, F))

    seed = jax.random.randint(k_seed, (1,), 0, jnp.iinfo(jnp.int32).max,
                              dtype=jnp.int32)

    grid_spec = pltpu.PrefetchScalarGridSpec(
        num_scalar_prefetch=1,
        grid=(n_tiles,),
        in_specs=[
            pl.BlockSpec((tm, IN_DIM), lambda i, s: (i, 0)),               # x rows (tiled)
            pl.BlockSpec((N_LAYERS, LANE, LANE), lambda i, s: (0, 0, 0)),  # W_mu (resident)
            pl.BlockSpec((N_LAYERS, LANE, LANE), lambda i, s: (0, 0, 0)),  # std_w^2 (resident)
            pl.BlockSpec((N_LAYERS, 1, LANE), lambda i, s: (0, 0, 0)),     # sampled biases
        ],
        out_specs=pl.BlockSpec((tm, OUT_DIM), lambda i, s: (i, 0)),
    )

    out_pad = pl.pallas_call(
        _bayes_mlp_kernel,
        out_shape=jax.ShapeDtypeStruct((m_pad, OUT_DIM), jnp.float32),
        grid_spec=grid_spec,
        compiler_params=pltpu.CompilerParams(
            dimension_semantics=("parallel",),
            vmem_limit_bytes=32 * 1024 * 1024),
    )(seed, x2, wmu, wvar, beff)

    u_xt = out_pad[:M].reshape(B, N, OUT_DIM)
    tlpw = jnp.float32(0.0)
    return u_xt, tlqw, tlpw


def init_params(key):
    """Matches BayesLinear_localreparam init: xavier_uniform W_mu (n_in, n_out),
    W_p ~ U(-6,-5), b_mu ~ U(-1e-8, 1e-8), b_p ~ U(-6,-5)."""
    dims = [(IN_DIM, HDIM), (HDIM, HDIM), (HDIM, HDIM), (HDIM, OUT_DIM)]
    params = []
    for (n_in, n_out), k in zip(dims, jax.random.split(key, len(dims))):
        k1, k2, k3, k4 = jax.random.split(k, 4)
        limit = (6.0 / (n_in + n_out)) ** 0.5
        params.append({
            "W_mu": jax.random.uniform(k1, (n_in, n_out), jnp.float32, -limit, limit),
            "W_p":  jax.random.uniform(k2, (n_in, n_out), jnp.float32, -6.0, -5.0),
            "b_mu": jax.random.uniform(k3, (n_out,), jnp.float32, -1e-8, 1e-8),
            "b_p":  jax.random.uniform(k4, (n_out,), jnp.float32, -6.0, -5.0),
        })
    return params


if __name__ == "__main__":
    root = jax.random.PRNGKey(0)
    k_param, k_x, k_fwd = jax.random.split(root, 3)

    params = init_params(k_param)

    B, N = 2, 8
    xt = jax.random.normal(k_x, (B, N, IN_DIM), jnp.float32)

    u_xt, tlqw, tlpw = pinn_bbb_forward(xt, params, k_fwd)
    u_xt = jax.block_until_ready(u_xt)

    assert u_xt.shape == (B, N, OUT_DIM)
    assert u_xt.dtype == jnp.float32
    assert bool(jnp.all(jnp.isfinite(u_xt)))
    assert bool(jnp.isfinite(tlqw))
    assert float(tlpw) == 0.0

    print("KERNEL_OK")
</pallas_src>

<mosaic_0001>
module attributes {stable_mosaic.version = 11 : i64} {
  func.func @_bayes_mlp_kernel(%arg0: i32, %arg1: memref<1xi32, #tpu.memory_space<smem>>, %arg2: memref<16x2xf32, #tpu.memory_space<vmem>>, %arg3: memref<4x128x128xf32, #tpu.memory_space<vmem>>, %arg4: memref<4x128x128xf32, #tpu.memory_space<vmem>>, %arg5: memref<4x1x128xf32, #tpu.memory_space<vmem>>, %arg6: memref<16x1xf32, #tpu.memory_space<vmem>>) attributes {dimension_semantics = [#tpu.dimension_semantics<parallel>], iteration_bounds = array<i64: 1>, scalar_prefetch = 1 : i64, scratch_operands = 0 : i64, tpu.core_type = #tpu.core_type<tc>, window_params = [{transform_indices = @transform_0, window_bounds = array<i64: 16, 2>}, {pipeline_mode = #tpu.pipeline_mode<synchronous>, transform_indices = @transform_1, window_bounds = array<i64: 4, 128, 128>}, {pipeline_mode = #tpu.pipeline_mode<synchronous>, transform_indices = @transform_2, window_bounds = array<i64: 4, 128, 128>}, {pipeline_mode = #tpu.pipeline_mode<synchronous>, transform_indices = @transform_3, window_bounds = array<i64: 4, 1, 128>}, {transform_indices = @transform_4, window_bounds = array<i64: 16, 1>}]} {
    %c0 = arith.constant 0 : index
    %0 = memref.load %arg1[%c0] : memref<1xi32, #tpu.memory_space<smem>>
    %c16_i32 = arith.constant 16 : i32
    %1 = arith.muli %arg0, %c16_i32 : i32
    %c0_0 = arith.constant 0 : index
    %c0_1 = arith.constant 0 : index
    %2 = vector.load %arg2[%c0_0, %c0_1] : memref<16x2xf32, #tpu.memory_space<vmem>>, vector<16x2xf32>
    %3 = vector.extract_strided_slice %2 {offsets = [0, 0], sizes = [16, 1], strides = [1, 1]} : vector<16x2xf32> to vector<16x1xf32>
    %4 = vector.extract_strided_slice %2 {offsets = [0, 1], sizes = [16, 1], strides = [1, 1]} : vector<16x2xf32> to vector<16x1xf32>
    %c0_2 = arith.constant 0 : index
    %c0_3 = arith.constant 0 : index
    %c0_4 = arith.constant 0 : index
    %5 = vector.load %arg3[%c0_2, %c0_3, %c0_4] : memref<4x128x128xf32, #tpu.memory_space<vmem>>, vector<1x128x128xf32>
    %6 = vector.shape_cast %5 : vector<1x128x128xf32> to vector<128x128xf32>
    %c0_5 = arith.constant 0 : index
    %c0_6 = arith.constant 0 : index
    %c0_7 = arith.constant 0 : index
    %7 = vector.load %arg4[%c0_5, %c0_6, %c0_7] : memref<4x128x128xf32, #tpu.memory_space<vmem>>, vector<1x128x128xf32>
    %8 = vector.shape_cast %7 : vector<1x128x128xf32> to vector<128x128xf32>
    %9 = vector.extract_strided_slice %6 {offsets = [0, 0], sizes = [1, 128], strides = [1, 1]} : vector<128x128xf32> to vector<1x128xf32>
    %10 = vector.broadcast %3 : vector<16x1xf32> to vector<16x128xf32>
    %11 = vector.broadcast %9 : vector<1x128xf32> to vector<16x128xf32>
    %12 = arith.mulf %10, %11 : vector<16x128xf32>
    %13 = vector.extract_strided_slice %6 {offsets = [1, 0], sizes = [1, 128], strides = [1, 1]} : vector<128x128xf32> to vector<1x128xf32>
    %14 = vector.broadcast %4 : vector<16x1xf32> to vector<16x128xf32>
    %15 = vector.broadcast %13 : vector<1x128xf32> to vector<16x128xf32>
    %16 = arith.mulf %14, %15 : vector<16x128xf32>
    %17 = arith.addf %12, %16 : vector<16x128xf32>
    %18 = arith.mulf %3, %3 : vector<16x1xf32>
    %19 = vector.extract_strided_slice %8 {offsets = [0, 0], sizes = [1, 128], strides = [1, 1]} : vector<128x128xf32> to vector<1x128xf32>
    %20 = vector.broadcast %18 : vector<16x1xf32> to vector<16x128xf32>
    %21 = vector.broadcast %19 : vector<1x128xf32> to vector<16x128xf32>
    %22 = arith.mulf %20, %21 : vector<16x128xf32>
    %23 = arith.mulf %4, %4 : vector<16x1xf32>
    %24 = vector.extract_strided_slice %8 {offsets = [1, 0], sizes = [1, 128], strides = [1, 1]} : vector<128x128xf32> to vector<1x128xf32>
    %25 = vector.broadcast %23 : vector<16x1xf32> to vector<16x128xf32>
    %26 = vector.broadcast %24 : vector<1x128xf32> to vector<16x128xf32>
    %27 = arith.mulf %25, %26 : vector<16x128xf32>
    %28 = arith.addf %22, %27 : vector<16x128xf32>
    %29 = tpu.iota {dimensions = array<i32: 0>} : vector<16x128xi32>
    %30 = vector.broadcast %1 : i32 to vector<16x128xi32>
    %31 = arith.addi %29, %30 : vector<16x128xi32>
    %32 = tpu.iota {dimensions = array<i32: 1>} : vector<16x128xi32>
    %c-1640531527_i32 = arith.constant -1640531527 : i32
    %33 = vector.broadcast %c-1640531527_i32 : i32 to vector<16x128xi32>
    %34 = arith.muli %31, %33 : vector<16x128xi32>
    %c-2048144789_i32 = arith.constant -2048144789 : i32
    %35 = vector.broadcast %c-2048144789_i32 : i32 to vector<16x128xi32>
    %36 = arith.muli %32, %35 : vector<16x128xi32>
    %37 = arith.xori %34, %36 : vector<16x128xi32>
    %38 = vector.broadcast %0 : i32 to vector<16x128xi32>
    %39 = arith.xori %37, %38 : vector<16x128xi32>
    %c1663821227_i32 = arith.constant 1663821227 : i32
    %40 = vector.broadcast %c1663821227_i32 : i32 to vector<16x128xi32>
    %41 = arith.xori %39, %40 : vector<16x128xi32>
    %c16_i32_8 = arith.constant 16 : i32
    %42 = vector.broadcast %c16_i32_8 : i32 to vector<16x128xi32>
    %43 = arith.shrui %41, %42 : vector<16x128xi32>
    %44 = arith.xori %41, %43 : vector<16x128xi32>
    %c-2048144789_i32_9 = arith.constant -2048144789 : i32
    %45 = vector.broadcast %c-2048144789_i32_9 : i32 to vector<16x128xi32>
    %46 = arith.muli %44, %45 : vector<16x128xi32>
    %c13_i32 = arith.constant 13 : i32
    %47 = vector.broadcast %c13_i32 : i32 to vector<16x128xi32>
    %48 = arith.shrui %46, %47 : vector<16x128xi32>
    %49 = arith.xori %46, %48 : vector<16x128xi32>
    %c-1028477387_i32 = arith.constant -1028477387 : i32
    %50 = vector.broadcast %c-1028477387_i32 : i32 to vector<16x128xi32>
    %51 = arith.muli %49, %50 : vector<16x128xi32>
    %c16_i32_10 = arith.constant 16 : i32
    %52 = vector.broadcast %c16_i32_10 : i32 to vector<16x128xi32>
    %53 = arith.shrui %51, %52 : vector<16x128xi32>
    %54 = arith.xori %51, %53 : vector<16x128xi32>
    %c1759714724_i32 = arith.constant 1759714724 : i32
    %55 = vector.broadcast %c1759714724_i32 : i32 to vector<16x128xi32>
    %56 = arith.xori %54, %55 : vector<16x128xi32>
    %c16_i32_11 = arith.constant 16 : i32
    %57 = vector.broadcast %c16_i32_11 : i32 to vector<16x128xi32>
    %58 = arith.shrui %56, %57 : vector<16x128xi32>
    %59 = arith.xori %56, %58 : vector<16x128xi32>
    %c-2048144789_i32_12 = arith.constant -2048144789 : i32
    %60 = vector.broadcast %c-2048144789_i32_12 : i32 to vector<16x128xi32>
    %61 = arith.muli %59, %60 : vector<16x128xi32>
    %c13_i32_13 = arith.constant 13 : i32
    %62 = vector.broadcast %c13_i32_13 : i32 to vector<16x128xi32>
    %63 = arith.shrui %61, %62 : vector<16x128xi32>
    %64 = arith.xori %61, %63 : vector<16x128xi32>
    %c-1028477387_i32_14 = arith.constant -1028477387 : i32
    %65 = vector.broadcast %c-1028477387_i32_14 : i32 to vector<16x128xi32>
    %66 = arith.muli %64, %65 : vector<16x128xi32>
    %c16_i32_15 = arith.constant 16 : i32
    %67 = vector.broadcast %c16_i32_15 : i32 to vector<16x128xi32>
    %68 = arith.shrui %66, %67 : vector<16x128xi32>
    %69 = arith.xori %66, %68 : vector<16x128xi32>
    %c9_i32 = arith.constant 9 : i32
    %70 = vector.broadcast %c9_i32 : i32 to vector<16x128xi32>
    %71 = arith.shrui %54, %70 : vector<16x128xi32>
    %72 = arith.sitofp %71 : vector<16x128xi32> to vector<16x128xf32>
    %cst = arith.constant 1.1920929E-7 : f32
    %73 = vector.broadcast %cst : f32 to vector<16x128xf32>
    %74 = arith.mulf %72, %73 : vector<16x128xf32>
    %cst_16 = arith.constant 5.96046448E-8 : f32
    %75 = vector.broadcast %cst_16 : f32 to vector<16x128xf32>
    %76 = arith.addf %74, %75 : vector<16x128xf32>
    %c9_i32_17 = arith.constant 9 : i32
    %77 = vector.broadcast %c9_i32_17 : i32 to vector<16x128xi32>
    %78 = arith.shrui %69, %77 : vector<16x128xi32>
    %79 = arith.sitofp %78 : vector<16x128xi32> to vector<16x128xf32>
    %cst_18 = arith.constant 1.1920929E-7 : f32
    %80 = vector.broadcast %cst_18 : f32 to vector<16x128xf32>
    %81 = arith.mulf %79, %80 : vector<16x128xf32>
    %cst_19 = arith.constant 5.96046448E-8 : f32
    %82 = vector.broadcast %cst_19 : f32 to vector<16x128xf32>
    %83 = arith.addf %81, %82 : vector<16x128xf32>
    %84 = math.log %76 : vector<16x128xf32>
    %cst_20 = arith.constant -2.000000e+00 : f32
    %85 = vector.broadcast %cst_20 : f32 to vector<16x128xf32>
    %86 = arith.mulf %85, %84 : vector<16x128xf32>
    %87 = math.sqrt %86 : vector<16x128xf32>
    %cst_21 = arith.constant 2.500000e-01 : f32
    %88 = vector.broadcast %cst_21 : f32 to vector<16x128xf32>
    %89 = arith.addf %83, %88 : vector<16x128xf32>
    %cst_22 = arith.constant 5.000000e-01 : f32
    %90 = vector.broadcast %cst_22 : f32 to vector<16x128xf32>
    %91 = arith.addf %89, %90 : vector<16x128xf32>
    %92 = math.floor %91 : vector<16x128xf32>
    %93 = arith.subf %89, %92 : vector<16x128xf32>
    %cst_23 = arith.constant 8.000000e+00 : f32
    %94 = vector.broadcast %cst_23 : f32 to vector<16x128xf32>
    %95 = arith.mulf %94, %93 : vector<16x128xf32>
    %cst_24 = arith.constant 1.600000e+01 : f32
    %96 = vector.broadcast %cst_24 : f32 to vector<16x128xf32>
    %97 = arith.mulf %96, %93 : vector<16x128xf32>
    %98 = math.absf %93 : vector<16x128xf32>
    %99 = arith.mulf %97, %98 : vector<16x128xf32>
    %100 = arith.subf %95, %99 : vector<16x128xf32>
    %101 = math.absf %100 : vector<16x128xf32>
    %102 = arith.mulf %100, %101 : vector<16x128xf32>
    %103 = arith.subf %102, %100 : vector<16x128xf32>
    %cst_25 = arith.constant 2.250000e-01 : f32
    %104 = vector.broadcast %cst_25 : f32 to vector<16x128xf32>
    %105 = arith.mulf %104, %103 : vector<16x128xf32>
    %106 = arith.addf %105, %100 : vector<16x128xf32>
    %107 = arith.mulf %87, %106 : vector<16x128xf32>
    %108 = math.sqrt %28 : vector<16x128xf32>
    %109 = arith.mulf %108, %107 : vector<16x128xf32>
    %110 = arith.addf %17, %109 : vector<16x128xf32>
    %c0_26 = arith.constant 0 : index
    %c0_27 = arith.constant 0 : index
    %c0_28 = arith.constant 0 : index
    %111 = vector.load %arg5[%c0_26, %c0_27, %c0_28] : memref<4x1x128xf32, #tpu.memory_space<vmem>>, vector<1x1x128xf32>
    %112 = vector.shape_cast %111 : vector<1x1x128xf32> to vector<1x128xf32>
    %113 = vector.broadcast %112 : vector<1x128xf32> to vector<16x128xf32>
    %114 = arith.addf %110, %113 : vector<16x128xf32>
    %115 = math.tanh %114 : vector<16x128xf32>
    %c1 = arith.constant 1 : index
    %c0_29 = arith.constant 0 : index
    %c0_30 = arith.constant 0 : index
    %116 = vector.load %arg3[%c1, %c0_29, %c0_30] : memref<4x128x128xf32, #tpu.memory_space<vmem>>, vector<1x128x128xf32>
    %117 = vector.shape_cast %116 : vector<1x128x128xf32> to vector<128x128xf32>
    %cst_31 = arith.constant dense<0.000000e+00> : vector<16x128xf32>
    %118 = tpu.matmul %115, %117, %cst_31 {dimension_numbers = #tpu.dot_dimension_numbers<[1], [0], [0], [1], [0, 0, 1, 1], [], []>} : vector<16x128xf32>, vector<128x128xf32>, vector<16x128xf32> -> vector<16x128xf32>
    %119 = arith.mulf %115, %115 : vector<16x128xf32>
    %c1_32 = arith.constant 1 : index
    %c0_33 = arith.constant 0 : index
    %c0_34 = arith.constant 0 : index
    %120 = vector.load %arg4[%c1_32, %c0_33, %c0_34] : memref<4x128x128xf32, #tpu.memory_space<vmem>>, vector<1x128x128xf32>
    %121 = vector.shape_cast %120 : vector<1x128x128xf32> to vector<128x128xf32>
    %cst_35 = arith.constant dense<0.000000e+00> : vector<16x128xf32>
    %122 = tpu.matmul %119, %121, %cst_35 {dimension_numbers = #tpu.dot_dimension_numbers<[1], [0], [0], [1], [0, 0, 1, 1], [], []>} : vector<16x128xf32>, vector<128x128xf32>, vector<16x128xf32> -> vector<16x128xf32>
    %123 = tpu.iota {dimensions = array<i32: 0>} : vector<16x128xi32>
    %124 = vector.broadcast %1 : i32 to vector<16x128xi32>
    %125 = arith.addi %123, %124 : vector<16x128xi32>
    %126 = tpu.iota {dimensions = array<i32: 1>} : vector<16x128xi32>
    %c-1640531527_i32_36 = arith.constant -1640531527 : i32
    %127 = vector.broadcast %c-1640531527_i32_36 : i32 to vector<16x128xi32>
    %128 = arith.muli %125, %127 : vector<16x128xi32>
    %c-2048144789_i32_37 = arith.constant -2048144789 : i32
    %129 = vector.broadcast %c-2048144789_i32_37 : i32 to vector<16x128xi32>
    %130 = arith.muli %126, %129 : vector<16x128xi32>
    %131 = arith.xori %128, %130 : vector<16x128xi32>
    %132 = vector.broadcast %0 : i32 to vector<16x128xi32>
    %133 = arith.xori %131, %132 : vector<16x128xi32>
    %c-967324842_i32 = arith.constant -967324842 : i32
    %134 = vector.broadcast %c-967324842_i32 : i32 to vector<16x128xi32>
    %135 = arith.xori %133, %134 : vector<16x128xi32>
    %c16_i32_38 = arith.constant 16 : i32
    %136 = vector.broadcast %c16_i32_38 : i32 to vector<16x128xi32>
    %137 = arith.shrui %135, %136 : vector<16x128xi32>
    %138 = arith.xori %135, %137 : vector<16x128xi32>
    %c-2048144789_i32_39 = arith.constant -2048144789 : i32
    %139 = vector.broadcast %c-2048144789_i32_39 : i32 to vector<16x128xi32>
    %140 = arith.muli %138, %139 : vector<16x128xi32>
    %c13_i32_40 = arith.constant 13 : i32
    %141 = vector.broadcast %c13_i32_40 : i32 to vector<16x128xi32>
    %142 = arith.shrui %140, %141 : vector<16x128xi32>
    %143 = arith.xori %140, %142 : vector<16x128xi32>
    %c-1028477387_i32_41 = arith.constant -1028477387 : i32
    %144 = vector.broadcast %c-1028477387_i32_41 : i32 to vector<16x128xi32>
    %145 = arith.muli %143, %144 : vector<16x128xi32>
    %c16_i32_42 = arith.constant 16 : i32
    %146 = vector.broadcast %c16_i32_42 : i32 to vector<16x128xi32>
    %147 = arith.shrui %145, %146 : vector<16x128xi32>
    %148 = arith.xori %145, %147 : vector<16x128xi32>
    %c1759714724_i32_43 = arith.constant 1759714724 : i32
    %149 = vector.broadcast %c1759714724_i32_43 : i32 to vector<16x128xi32>
    %150 = arith.xori %148, %149 : vector<16x128xi32>
    %c16_i32_44 = arith.constant 16 : i32
    %151 = vector.broadcast %c16_i32_44 : i32 to vector<16x128xi32>
    %152 = arith.shrui %150, %151 : vector<16x128xi32>
    %153 = arith.xori %150, %152 : vector<16x128xi32>
    %c-2048144789_i32_45 = arith.constant -2048144789 : i32
    %154 = vector.broadcast %c-2048144789_i32_45 : i32 to vector<16x128xi32>
    %155 = arith.muli %153, %154 : vector<16x128xi32>
    %c13_i32_46 = arith.constant 13 : i32
    %156 = vector.broadcast %c13_i32_46 : i32 to vector<16x128xi32>
    %157 = arith.shrui %155, %156 : vector<16x128xi32>
    %158 = arith.xori %155, %157 : vector<16x128xi32>
    %c-1028477387_i32_47 = arith.constant -1028477387 : i32
    %159 = vector.broadcast %c-1028477387_i32_47 : i32 to vector<16x128xi32>
    %160 = arith.muli %158, %159 : vector<16x128xi32>
    %c16_i32_48 = arith.constant 16 : i32
    %161 = vector.broadcast %c16_i32_48 : i32 to vector<16x128xi32>
    %162 = arith.shrui %160, %161 : vector<16x128xi32>
    %163 = arith.xori %160, %162 : vector<16x128xi32>
    %c9_i32_49 = arith.constant 9 : i32
    %164 = vector.broadcast %c9_i32_49 : i32 to vector<16x128xi32>
    %165 = arith.shrui %148, %164 : vector<16x128xi32>
    %166 = arith.sitofp %165 : vector<16x128xi32> to vector<16x128xf32>
    %cst_50 = arith.constant 1.1920929E-7 : f32
    %167 = vector.broadcast %cst_50 : f32 to vector<16x128xf32>
    %168 = arith.mulf %166, %167 : vector<16x128xf32>
    %cst_51 = arith.constant 5.96046448E-8 : f32
    %169 = vector.broadcast %cst_51 : f32 to vector<16x128xf32>
    %170 = arith.addf %168, %169 : vector<16x128xf32>
    %c9_i32_52 = arith.constant 9 : i32
    %171 = vector.broadcast %c9_i32_52 : i32 to vector<16x128xi32>
    %172 = arith.shrui %163, %171 : vector<16x128xi32>
    %173 = arith.sitofp %172 : vector<16x128xi32> to vector<16x128xf32>
    %cst_53 = arith.constant 1.1920929E-7 : f32
    %174 = vector.broadcast %cst_53 : f32 to vector<16x128xf32>
    %175 = arith.mulf %173, %174 : vector<16x128xf32>
    %cst_54 = arith.constant 5.96046448E-8 : f32
    %176 = vector.broadcast %cst_54 : f32 to vector<16x128xf32>
    %177 = arith.addf %175, %176 : vector<16x128xf32>
    %178 = math.log %170 : vector<16x128xf32>
    %cst_55 = arith.constant -2.000000e+00 : f32
    %179 = vector.broadcast %cst_55 : f32 to vector<16x128xf32>
    %180 = arith.mulf %179, %178 : vector<16x128xf32>
    %181 = math.sqrt %180 : vector<16x128xf32>
    %cst_56 = arith.constant 2.500000e-01 : f32
    %182 = vector.broadcast %cst_56 : f32 to vector<16x128xf32>
    %183 = arith.addf %177, %182 : vector<16x128xf32>
    %cst_57 = arith.constant 5.000000e-01 : f32
    %184 = vector.broadcast %cst_57 : f32 to vector<16x128xf32>
    %185 = arith.addf %183, %184 : vector<16x128xf32>
    %186 = math.floor %185 : vector<16x128xf32>
    %187 = arith.subf %183, %186 : vector<16x128xf32>
    %cst_58 = arith.constant 8.000000e+00 : f32
    %188 = vector.broadcast %cst_58 : f32 to vector<16x128xf32>
    %189 = arith.mulf %188, %187 : vector<16x128xf32>
    %cst_59 = arith.constant 1.600000e+01 : f32
    %190 = vector.broadcast %cst_59 : f32 to vector<16x128xf32>
    %191 = arith.mulf %190, %187 : vector<16x128xf32>
    %192 = math.absf %187 : vector<16x128xf32>
    %193 = arith.mulf %191, %192 : vector<16x128xf32>
    %194 = arith.subf %189, %193 : vector<16x128xf32>
    %195 = math.absf %194 : vector<16x128xf32>
    %196 = arith.mulf %194, %195 : vector<16x128xf32>
    %197 = arith.subf %196, %194 : vector<16x128xf32>
    %cst_60 = arith.constant 2.250000e-01 : f32
    %198 = vector.broadcast %cst_60 : f32 to vector<16x128xf32>
    %199 = arith.mulf %198, %197 : vector<16x128xf32>
    %200 = arith.addf %199, %194 : vector<16x128xf32>
    %201 = arith.mulf %181, %200 : vector<16x128xf32>
    %202 = math.sqrt %122 : vector<16x128xf32>
    %203 = arith.mulf %202, %201 : vector<16x128xf32>
    %204 = arith.addf %118, %203 : vector<16x128xf32>
    %c1_61 = arith.constant 1 : index
    %c0_62 = arith.constant 0 : index
    %c0_63 = arith.constant 0 : index
    %205 = vector.load %arg5[%c1_61, %c0_62, %c0_63] : memref<4x1x128xf32, #tpu.memory_space<vmem>>, vector<1x1x128xf32>
    %206 = vector.shape_cast %205 : vector<1x1x128xf32> to vector<1x128xf32>
    %207 = vector.broadcast %206 : vector<1x128xf32> to vector<16x128xf32>
    %208 = arith.addf %204, %207 : vector<16x128xf32>
    %209 = math.tanh %208 : vector<16x128xf32>
    %c2 = arith.constant 2 : index
    %c0_64 = arith.constant 0 : index
    %c0_65 = arith.constant 0 : index
    %210 = vector.load %arg3[%c2, %c0_64, %c0_65] : memref<4x128x128xf32, #tpu.memory_space<vmem>>, vector<1x128x128xf32>
    %211 = vector.shape_cast %210 : vector<1x128x128xf32> to vector<128x128xf32>
    %cst_66 = arith.constant dense<0.000000e+00> : vector<16x128xf32>
    %212 = tpu.matmul %209, %211, %cst_66 {dimension_numbers = #tpu.dot_dimension_numbers<[1], [0], [0], [1], [0, 0, 1, 1], [], []>} : vector<16x128xf32>, vector<128x128xf32>, vector<16x128xf32> -> vector<16x128xf32>
    %213 = arith.mulf %209, %209 : vector<16x128xf32>
    %c2_67 = arith.constant 2 : index
    %c0_68 = arith.constant 0 : index
    %c0_69 = arith.constant 0 : index
    %214 = vector.load %arg4[%c2_67, %c0_68, %c0_69] : memref<4x128x128xf32, #tpu.memory_space<vmem>>, vector<1x128x128xf32>
    %215 = vector.shape_cast %214 : vector<1x128x128xf32> to vector<128x128xf32>
    %cst_70 = arith.constant dense<0.000000e+00> : vector<16x128xf32>
    %216 = tpu.matmul %213, %215, %cst_70 {dimension_numbers = #tpu.dot_dimension_numbers<[1], [0], [0], [1], [0, 0, 1, 1], [], []>} : vector<16x128xf32>, vector<128x128xf32>, vector<16x128xf32> -> vector<16x128xf32>
    %217 = tpu.iota {dimensions = array<i32: 0>} : vector<16x128xi32>
    %218 = vector.broadcast %1 : i32 to vector<16x128xi32>
    %219 = arith.addi %217, %218 : vector<16x128xi32>
    %220 = tpu.iota {dimensions = array<i32: 1>} : vector<16x128xi32>
    %c-1640531527_i32_71 = arith.constant -1640531527 : i32
    %221 = vector.broadcast %c-1640531527_i32_71 : i32 to vector<16x128xi32>
    %222 = arith.muli %219, %221 : vector<16x128xi32>
    %c-2048144789_i32_72 = arith.constant -2048144789 : i32
    %223 = vector.broadcast %c-2048144789_i32_72 : i32 to vector<16x128xi32>
    %224 = arith.muli %220, %223 : vector<16x128xi32>
    %225 = arith.xori %222, %224 : vector<16x128xi32>
    %226 = vector.broadcast %0 : i32 to vector<16x128xi32>
    %227 = arith.xori %225, %226 : vector<16x128xi32>
    %c696496385_i32 = arith.constant 696496385 : i32
    %228 = vector.broadcast %c696496385_i32 : i32 to vector<16x128xi32>
    %229 = arith.xori %227, %228 : vector<16x128xi32>
    %c16_i32_73 = arith.constant 16 : i32
    %230 = vector.broadcast %c16_i32_73 : i32 to vector<16x128xi32>
    %231 = arith.shrui %229, %230 : vector<16x128xi32>
    %232 = arith.xori %229, %231 : vector<16x128xi32>
    %c-2048144789_i32_74 = arith.constant -2048144789 : i32
    %233 = vector.broadcast %c-2048144789_i32_74 : i32 to vector<16x128xi32>
    %234 = arith.muli %232, %233 : vector<16x128xi32>
    %c13_i32_75 = arith.constant 13 : i32
    %235 = vector.broadcast %c13_i32_75 : i32 to vector<16x128xi32>
    %236 = arith.shrui %234, %235 : vector<16x128xi32>
    %237 = arith.xori %234, %236 : vector<16x128xi32>
    %c-1028477387_i32_76 = arith.constant -1028477387 : i32
    %238 = vector.broadcast %c-1028477387_i32_76 : i32 to vector<16x128xi32>
    %239 = arith.muli %237, %238 : vector<16x128xi32>
    %c16_i32_77 = arith.constant 16 : i32
    %240 = vector.broadcast %c16_i32_77 : i32 to vector<16x128xi32>
    %241 = arith.shrui %239, %240 : vector<16x128xi32>
    %242 = arith.xori %239, %241 : vector<16x128xi32>
    %c1759714724_i32_78 = arith.constant 1759714724 : i32
    %243 = vector.broadcast %c1759714724_i32_78 : i32 to vector<16x128xi32>
    %244 = arith.xori %242, %243 : vector<16x128xi32>
    %c16_i32_79 = arith.constant 16 : i32
    %245 = vector.broadcast %c16_i32_79 : i32 to vector<16x128xi32>
    %246 = arith.shrui %244, %245 : vector<16x128xi32>
    %247 = arith.xori %244, %246 : vector<16x128xi32>
    %c-2048144789_i32_80 = arith.constant -2048144789 : i32
    %248 = vector.broadcast %c-2048144789_i32_80 : i32 to vector<16x128xi32>
    %249 = arith.muli %247, %248 : vector<16x128xi32>
    %c13_i32_81 = arith.constant 13 : i32
    %250 = vector.broadcast %c13_i32_81 : i32 to vector<16x128xi32>
    %251 = arith.shrui %249, %250 : vector<16x128xi32>
    %252 = arith.xori %249, %251 : vector<16x128xi32>
    %c-1028477387_i32_82 = arith.constant -1028477387 : i32
    %253 = vector.broadcast %c-1028477387_i32_82 : i32 to vector<16x128xi32>
    %254 = arith.muli %252, %253 : vector<16x128xi32>
    %c16_i32_83 = arith.constant 16 : i32
    %255 = vector.broadcast %c16_i32_83 : i32 to vector<16x128xi32>
    %256 = arith.shrui %254, %255 : vector<16x128xi32>
    %257 = arith.xori %254, %256 : vector<16x128xi32>
    %c9_i32_84 = arith.constant 9 : i32
    %258 = vector.broadcast %c9_i32_84 : i32 to vector<16x128xi32>
    %259 = arith.shrui %242, %258 : vector<16x128xi32>
    %260 = arith.sitofp %259 : vector<16x128xi32> to vector<16x128xf32>
    %cst_85 = arith.constant 1.1920929E-7 : f32
    %261 = vector.broadcast %cst_85 : f32 to vector<16x128xf32>
    %262 = arith.mulf %260, %261 : vector<16x128xf32>
    %cst_86 = arith.constant 5.96046448E-8 : f32
    %263 = vector.broadcast %cst_86 : f32 to vector<16x128xf32>
    %264 = arith.addf %262, %263 : vector<16x128xf32>
    %c9_i32_87 = arith.constant 9 : i32
    %265 = vector.broadcast %c9_i32_87 : i32 to vector<16x128xi32>
    %266 = arith.shrui %257, %265 : vector<16x128xi32>
    %267 = arith.sitofp %266 : vector<16x128xi32> to vector<16x128xf32>
    %cst_88 = arith.constant 1.1920929E-7 : f32
    %268 = vector.broadcast %cst_88 : f32 to vector<16x128xf32>
    %269 = arith.mulf %267, %268 : vector<16x128xf32>
    %cst_89 = arith.constant 5.96046448E-8 : f32
    %270 = vector.broadcast %cst_89 : f32 to vector<16x128xf32>
    %271 = arith.addf %269, %270 : vector<16x128xf32>
    %272 = math.log %264 : vector<16x128xf32>
    %cst_90 = arith.constant -2.000000e+00 : f32
    %273 = vector.broadcast %cst_90 : f32 to vector<16x128xf32>
    %274 = arith.mulf %273, %272 : vector<16x128xf32>
    %275 = math.sqrt %274 : vector<16x128xf32>
    %cst_91 = arith.constant 2.500000e-01 : f32
    %276 = vector.broadcast %cst_91 : f32 to vector<16x128xf32>
    %277 = arith.addf %271, %276 : vector<16x128xf32>
    %cst_92 = arith.constant 5.000000e-01 : f32
    %278 = vector.broadcast %cst_92 : f32 to vector<16x128xf32>
    %279 = arith.addf %277, %278 : vector<16x128xf32>
    %280 = math.floor %279 : vector<16x128xf32>
    %281 = arith.subf %277, %280 : vector<16x128xf32>
    %cst_93 = arith.constant 8.000000e+00 : f32
    %282 = vector.broadcast %cst_93 : f32 to vector<16x128xf32>
    %283 = arith.mulf %282, %281 : vector<16x128xf32>
    %cst_94 = arith.constant 1.600000e+01 : f32
    %284 = vector.broadcast %cst_94 : f32 to vector<16x128xf32>
    %285 = arith.mulf %284, %281 : vector<16x128xf32>
    %286 = math.absf %281 : vector<16x128xf32>
    %287 = arith.mulf %285, %286 : vector<16x128xf32>
    %288 = arith.subf %283, %287 : vector<16x128xf32>
    %289 = math.absf %288 : vector<16x128xf32>
    %290 = arith.mulf %288, %289 : vector<16x128xf32>
    %291 = arith.subf %290, %288 : vector<16x128xf32>
    %cst_95 = arith.constant 2.250000e-01 : f32
    %292 = vector.broadcast %cst_95 : f32 to vector<16x128xf32>
    %293 = arith.mulf %292, %291 : vector<16x128xf32>
    %294 = arith.addf %293, %288 : vector<16x128xf32>
    %295 = arith.mulf %275, %294 : vector<16x128xf32>
    %296 = math.sqrt %216 : vector<16x128xf32>
    %297 = arith.mulf %296, %295 : vector<16x128xf32>
    %298 = arith.addf %212, %297 : vector<16x128xf32>
    %c2_96 = arith.constant 2 : index
    %c0_97 = arith.constant 0 : index
    %c0_98 = arith.constant 0 : index
    %299 = vector.load %arg5[%c2_96, %c0_97, %c0_98] : memref<4x1x128xf32, #tpu.memory_space<vmem>>, vector<1x1x128xf32>
    %300 = vector.shape_cast %299 : vector<1x1x128xf32> to vector<1x128xf32>
    %301 = vector.broadcast %300 : vector<1x128xf32> to vector<16x128xf32>
    %302 = arith.addf %298, %301 : vector<16x128xf32>
    %303 = math.tanh %302 : vector<16x128xf32>
    %c3 = arith.constant 3 : index
    %c0_99 = arith.constant 0 : index
    %c0_100 = arith.constant 0 : index
    %304 = vector.load %arg3[%c3, %c0_99, %c0_100] : memref<4x128x128xf32, #tpu.memory_space<vmem>>, vector<1x128x128xf32>
    %305 = vector.shape_cast %304 : vector<1x128x128xf32> to vector<128x128xf32>
    %cst_101 = arith.constant dense<0.000000e+00> : vector<16x128xf32>
    %306 = tpu.matmul %303, %305, %cst_101 {dimension_numbers = #tpu.dot_dimension_numbers<[1], [0], [0], [1], [0, 0, 1, 1], [], []>} : vector<16x128xf32>, vector<128x128xf32>, vector<16x128xf32> -> vector<16x128xf32>
    %307 = arith.mulf %303, %303 : vector<16x128xf32>
    %c3_102 = arith.constant 3 : index
    %c0_103 = arith.constant 0 : index
    %c0_104 = arith.constant 0 : index
    %308 = vector.load %arg4[%c3_102, %c0_103, %c0_104] : memref<4x128x128xf32, #tpu.memory_space<vmem>>, vector<1x128x128xf32>
    %309 = vector.shape_cast %308 : vector<1x128x128xf32> to vector<128x128xf32>
    %cst_105 = arith.constant dense<0.000000e+00> : vector<16x128xf32>
    %310 = tpu.matmul %307, %309, %cst_105 {dimension_numbers = #tpu.dot_dimension_numbers<[1], [0], [0], [1], [0, 0, 1, 1], [], []>} : vector<16x128xf32>, vector<128x128xf32>, vector<16x128xf32> -> vector<16x128xf32>
    %311 = tpu.iota {dimensions = array<i32: 0>} : vector<16x128xi32>
    %312 = vector.broadcast %1 : i32 to vector<16x128xi32>
    %313 = arith.addi %311, %312 : vector<16x128xi32>
    %314 = tpu.iota {dimensions = array<i32: 1>} : vector<16x128xi32>
    %c-1640531527_i32_106 = arith.constant -1640531527 : i32
    %315 = vector.broadcast %c-1640531527_i32_106 : i32 to vector<16x128xi32>
    %316 = arith.muli %313, %315 : vector<16x128xi32>
    %c-2048144789_i32_107 = arith.constant -2048144789 : i32
    %317 = vector.broadcast %c-2048144789_i32_107 : i32 to vector<16x128xi32>
    %318 = arith.muli %314, %317 : vector<16x128xi32>
    %319 = arith.xori %316, %318 : vector<16x128xi32>
    %320 = vector.broadcast %0 : i32 to vector<16x128xi32>
    %321 = arith.xori %319, %320 : vector<16x128xi32>
    %c-1934649684_i32 = arith.constant -1934649684 : i32
    %322 = vector.broadcast %c-1934649684_i32 : i32 to vector<16x128xi32>
    %323 = arith.xori %321, %322 : vector<16x128xi32>
    %c16_i32_108 = arith.constant 16 : i32
    %324 = vector.broadcast %c16_i32_108 : i32 to vector<16x128xi32>
    %325 = arith.shrui %323, %324 : vector<16x128xi32>
    %326 = arith.xori %323, %325 : vector<16x128xi32>
    %c-2048144789_i32_109 = arith.constant -2048144789 : i32
    %327 = vector.broadcast %c-2048144789_i32_109 : i32 to vector<16x128xi32>
    %328 = arith.muli %326, %327 : vector<16x128xi32>
    %c13_i32_110 = arith.constant 13 : i32
    %329 = vector.broadcast %c13_i32_110 : i32 to vector<16x128xi32>
    %330 = arith.shrui %328, %329 : vector<16x128xi32>
    %331 = arith.xori %328, %330 : vector<16x128xi32>
    %c-1028477387_i32_111 = arith.constant -1028477387 : i32
    %332 = vector.broadcast %c-1028477387_i32_111 : i32 to vector<16x128xi32>
    %333 = arith.muli %331, %332 : vector<16x128xi32>
    %c16_i32_112 = arith.constant 16 : i32
    %334 = vector.broadcast %c16_i32_112 : i32 to vector<16x128xi32>
    %335 = arith.shrui %333, %334 : vector<16x128xi32>
    %336 = arith.xori %333, %335 : vector<16x128xi32>
    %c1759714724_i32_113 = arith.constant 1759714724 : i32
    %337 = vector.broadcast %c1759714724_i32_113 : i32 to vector<16x128xi32>
    %338 = arith.xori %336, %337 : vector<16x128xi32>
    %c16_i32_114 = arith.constant 16 : i32
    %339 = vector.broadcast %c16_i32_114 : i32 to vector<16x128xi32>
    %340 = arith.shrui %338, %339 : vector<16x128xi32>
    %341 = arith.xori %338, %340 : vector<16x128xi32>
    %c-2048144789_i32_115 = arith.constant -2048144789 : i32
    %342 = vector.broadcast %c-2048144789_i32_115 : i32 to vector<16x128xi32>
    %343 = arith.muli %341, %342 : vector<16x128xi32>
    %c13_i32_116 = arith.constant 13 : i32
    %344 = vector.broadcast %c13_i32_116 : i32 to vector<16x128xi32>
    %345 = arith.shrui %343, %344 : vector<16x128xi32>
    %346 = arith.xori %343, %345 : vector<16x128xi32>
    %c-1028477387_i32_117 = arith.constant -1028477387 : i32
    %347 = vector.broadcast %c-1028477387_i32_117 : i32 to vector<16x128xi32>
    %348 = arith.muli %346, %347 : vector<16x128xi32>
    %c16_i32_118 = arith.constant 16 : i32
    %349 = vector.broadcast %c16_i32_118 : i32 to vector<16x128xi32>
    %350 = arith.shrui %348, %349 : vector<16x128xi32>
    %351 = arith.xori %348, %350 : vector<16x128xi32>
    %c9_i32_119 = arith.constant 9 : i32
    %352 = vector.broadcast %c9_i32_119 : i32 to vector<16x128xi32>
    %353 = arith.shrui %336, %352 : vector<16x128xi32>
    %354 = arith.sitofp %353 : vector<16x128xi32> to vector<16x128xf32>
    %cst_120 = arith.constant 1.1920929E-7 : f32
    %355 = vector.broadcast %cst_120 : f32 to vector<16x128xf32>
    %356 = arith.mulf %354, %355 : vector<16x128xf32>
    %cst_121 = arith.constant 5.96046448E-8 : f32
    %357 = vector.broadcast %cst_121 : f32 to vector<16x128xf32>
    %358 = arith.addf %356, %357 : vector<16x128xf32>
    %c9_i32_122 = arith.constant 9 : i32
    %359 = vector.broadcast %c9_i32_122 : i32 to vector<16x128xi32>
    %360 = arith.shrui %351, %359 : vector<16x128xi32>
    %361 = arith.sitofp %360 : vector<16x128xi32> to vector<16x128xf32>
    %cst_123 = arith.constant 1.1920929E-7 : f32
    %362 = vector.broadcast %cst_123 : f32 to vector<16x128xf32>
    %363 = arith.mulf %361, %362 : vector<16x128xf32>
    %cst_124 = arith.constant 5.96046448E-8 : f32
    %364 = vector.broadcast %cst_124 : f32 to vector<16x128xf32>
    %365 = arith.addf %363, %364 : vector<16x128xf32>
    %366 = math.log %358 : vector<16x128xf32>
    %cst_125 = arith.constant -2.000000e+00 : f32
    %367 = vector.broadcast %cst_125 : f32 to vector<16x128xf32>
    %368 = arith.mulf %367, %366 : vector<16x128xf32>
    %369 = math.sqrt %368 : vector<16x128xf32>
    %cst_126 = arith.constant 2.500000e-01 : f32
    %370 = vector.broadcast %cst_126 : f32 to vector<16x128xf32>
    %371 = arith.addf %365, %370 : vector<16x128xf32>
    %cst_127 = arith.constant 5.000000e-01 : f32
    %372 = vector.broadcast %cst_127 : f32 to vector<16x128xf32>
    %373 = arith.addf %371, %372 : vector<16x128xf32>
    %374 = math.floor %373 : vector<16x128xf32>
    %375 = arith.subf %371, %374 : vector<16x128xf32>
    %cst_128 = arith.constant 8.000000e+00 : f32
    %376 = vector.broadcast %cst_128 : f32 to vector<16x128xf32>
    %377 = arith.mulf %376, %375 : vector<16x128xf32>
    %cst_129 = arith.constant 1.600000e+01 : f32
    %378 = vector.broadcast %cst_129 : f32 to vector<16x128xf32>
    %379 = arith.mulf %378, %375 : vector<16x128xf32>
    %380 = math.absf %375 : vector<16x128xf32>
    %381 = arith.mulf %379, %380 : vector<16x128xf32>
    %382 = arith.subf %377, %381 : vector<16x128xf32>
    %383 = math.absf %382 : vector<16x128xf32>
    %384 = arith.mulf %382, %383 : vector<16x128xf32>
    %385 = arith.subf %384, %382 : vector<16x128xf32>
    %cst_130 = arith.constant 2.250000e-01 : f32
    %386 = vector.broadcast %cst_130 : f32 to vector<16x128xf32>
    %387 = arith.mulf %386, %385 : vector<16x128xf32>
    %388 = arith.addf %387, %382 : vector<16x128xf32>
    %389 = arith.mulf %369, %388 : vector<16x128xf32>
    %390 = math.sqrt %310 : vector<16x128xf32>
    %391 = arith.mulf %390, %389 : vector<16x128xf32>
    %392 = arith.addf %306, %391 : vector<16x128xf32>
    %c3_131 = arith.constant 3 : index
    %c0_132 = arith.constant 0 : index
    %c0_133 = arith.constant 0 : index
    %393 = vector.load %arg5[%c3_131, %c0_132, %c0_133] : memref<4x1x128xf32, #tpu.memory_space<vmem>>, vector<1x1x128xf32>
    %394 = vector.shape_cast %393 : vector<1x1x128xf32> to vector<1x128xf32>
    %395 = vector.broadcast %394 : vector<1x128xf32> to vector<16x128xf32>
    %396 = arith.addf %392, %395 : vector<16x128xf32>
    %397 = vector.extract_strided_slice %396 {offsets = [0, 0], sizes = [16, 1], strides = [1, 1]} : vector<16x128xf32> to vector<16x1xf32>
    %c0_134 = arith.constant 0 : index
    %c0_135 = arith.constant 0 : index
    %398 = vector.load %arg6[%c0_134, %c0_135] : memref<16x1xf32, #tpu.memory_space<vmem>>, vector<16x1xf32>
    tpu.vector_store %arg6[%c0_134, %c0_135], %397 {strides = array<i32>} : memref<16x1xf32, #tpu.memory_space<vmem>>, vector<16x1xf32>,
    return
  }
  func.func @transform_0(%arg0: i32, %arg1: memref<1xi32, #tpu.memory_space<smem>>) -> (i32, i32) {
    %c0_i32 = arith.constant 0 : i32
    %c0_i32_0 = arith.constant 0 : i32
    return %arg0, %c0_i32 : i32, i32
  }
  func.func @transform_1(%arg0: i32, %arg1: memref<1xi32, #tpu.memory_space<smem>>) -> (i32, i32, i32) {
    %c0_i32 = arith.constant 0 : i32
    %c0_i32_0 = arith.constant 0 : i32
    %c0_i32_1 = arith.constant 0 : i32
    %c0_i32_2 = arith.constant 0 : i32
    return %c0_i32, %c0_i32_0, %c0_i32_1 : i32, i32, i32
  }
  func.func @transform_2(%arg0: i32, %arg1: memref<1xi32, #tpu.memory_space<smem>>) -> (i32, i32, i32) {
    %c0_i32 = arith.constant 0 : i32
    %c0_i32_0 = arith.constant 0 : i32
    %c0_i32_1 = arith.constant 0 : i32
    %c0_i32_2 = arith.constant 0 : i32
    return %c0_i32, %c0_i32_0, %c0_i32_1 : i32, i32, i32
  }
  func.func @transform_3(%arg0: i32, %arg1: memref<1xi32, #tpu.memory_space<smem>>) -> (i32, i32, i32) {
    %c0_i32 = arith.constant 0 : i32
    %c0_i32_0 = arith.constant 0 : i32
    %c0_i32_1 = arith.constant 0 : i32
    %c0_i32_2 = arith.constant 0 : i32
    return %c0_i32, %c0_i32_0, %c0_i32_1 : i32, i32, i32
  }
  func.func @transform_4(%arg0: i32, %arg1: memref<1xi32, #tpu.memory_space<smem>>) -> (i32, i32) {
    %c0_i32 = arith.constant 0 : i32
    %c0_i32_0 = arith.constant 0 : i32
    return %arg0, %c0_i32 : i32, i32
  }
}

</mosaic_0001>

<bundles_post_ra>
// kernel: ne.6
= control target key start
LH: loop header
LB: loop body
LE: loop exit
PB: predicated region body
PF: predicated region fallthrough
CT: control target
= control target key end

     0   :  { %v15_v2 = vmov 0   ;;  %s40_s0 = inlined_call_operand.vmem [shape: f32[20,1], index: 0, kind: input, shape index: {}, may-alias: {0,1}]   ;;  %s41_s1 = inlined_call_operand.vmem [shape: f32[20,1], index: 1, kind: input, shape index: {}, may-alias: {0,1}]   ;;  %s42_s2 = inlined_call_operand.vmem [shape: pred[20,1], index: 2, kind: output, shape index: {}]  }
   0x1   :  { %v3_v0 = vld [vmem:[%s40_s0] sm:$0x1] }
   0x2   :  { %v4_v1 = vld [vmem:[%s41_s1] sm:$0x1] }
   0x3   :  { %vm7_vm0 = vcmp.ne.f32.partialorder %v3_v0, %v4_v1 }
   0x4   :  { %v8_v3 = vsel %vm7_vm0, 1, %v15_v2 }
   0x5   :  { %v10_v4 = vpack.c.b16 %v15_v2, %v8_v3 }
   0x7   :  { %v11_v5 = vpack.c.b8 %v15_v2, %v10_v4 }
   0x9   :  { %13 = vst [vmem:[%s42_s2] sm:$0x1] %v11_v5 }

// kernel: mul.63
= control target key start
LH: loop header
LB: loop body
LE: loop exit
PB: predicated region body
PF: predicated region fallthrough
CT: control target
= control target key end

     0   :  { %s78_s0 = inlined_call_operand.vmem [shape: f32[20,1], index: 0, kind: input, shape index: {}, may-alias: {0,1}]   ;;  %s79_s1 = inlined_call_operand.vmem [shape: f32[20,1], index: 1, kind: input, shape index: {}, may-alias: {0,1}]   ;;  %s80_s2 = inlined_call_operand.vmem [shape: f32[20,1], index: 2, kind: output, shape index: {}]  }
   0x1   :  { %v3_v0 = vld [vmem:[%s78_s0] sm:$0xff]  ;;  %v30_v2 = vld [vmem:[%s78_s0 + $0x8] sm:$0xff]  ;;  %v33_v5 = vld [vmem:[%s78_s0 + $0x10] sm:$0xff] }
   0x2   :  { %v4_v1 = vld [vmem:[%s79_s1] sm:$0xff]  ;;  %v31_v4 = vld [vmem:[%s79_s1 + $0x8] sm:$0xff]  ;;  %v34_v6 = vld [vmem:[%s79_s1 + $0x10] sm:$0xff] }
   0x3   :  { %v7_v3 = vmul.f32 %v4_v1, %v3_v0  ;;  %v16_v7 = vmul.f32 %v31_v4, %v30_v2  ;;  %v26_v8 = vmul.f32 %v34_v6, %v33_v5 }
   0x5   :  { %9 = vst [vmem:[%s80_s2] sm:$0xff] %v7_v3  ;;  %32 = vst [vmem:[%s80_s2 + $0x8] sm:$0xff] %v16_v7 }
   0x6   :  { %35 = vst [vmem:[%s80_s2 + $0x10] sm:$0xff] %v26_v8 }

// kernel: pinn_bbb_forward.3
= control target key start
LH: loop header
LB: loop body
LE: loop exit
PB: predicated region body
PF: predicated region fallthrough
CT: control target
= control target key end

     0   :  { %v35_v0 = vlaneseq  ;;  %v1871_v1 = vmov 0   ;;  %v1872_v13 = vmov 1   ;;  %s2250_s1 = inlined_call_operand.vmem [shape: f32[16,2], index: 1, kind: input, shape index: {}]   ;;  %s2251_s0 = inlined_call_operand.<no memory space> [shape: s32[1], index: 0, kind: input, shape index: {}]   ;;  %s2252_s2 = inlined_call_operand.vmem [shape: f32[4,128,128], index: 2, kind: input, shape index: {}]   ;;  %s2253_s3 = inlined_call_operand.vmem [shape: f32[4,128,128], index: 3, kind: input, shape index: {}]   ;;  %s2254_s4 = inlined_call_operand.vmem [shape: f32[4,1,128], index: 4, kind: input, shape index: {}]   ;;  %s2255_s5 = inlined_call_operand.vmem [shape: f32[16,1], index: 5, kind: output, shape index: {}]  }
   0x1   :  { %1808 = vset.pattern.permute.xlu1 %v1871_v1  ;;  %1806 = vset.pattern.permute.xlu0 %v1871_v1  ;;  %v22_v2 = vld [vmem:[%s2250_s1 + $0x8] sm:$0xff]  ;;  %v21_v3 = vld [vmem:[%s2250_s1] sm:$0xff]  ;;  %v104_v15 = vstv %s2251_s0  ;;  %v1194_v36 = vld [vmem:[%s2252_s2 + $0x90] sm:$0xff] }
   0x2   :  { %v58_v4 = vmul.f32 %v22_v2, %v22_v2  ;;  %v57_v5 = vmul.f32 %v21_v3, %v21_v3  ;;  %v1909_v6 = vshrl.u32 %v35_v0, 7  ;;  %v98_v7 = vand.u32 127, %v35_v0  ;;  %v1192_v30 = vld [vmem:[%s2252_s2 + $0x80] sm:$0xff]  ;;  %v1193_v31 = vld [vmem:[%s2252_s2 + $0x88] sm:$0xff]  ;;  %v1195_v37 = vld [vmem:[%s2252_s2 + $0x98] sm:$0xff] }
   0x3   :  { %v1208_v32 = vld [vmem:[%s2253_s3 + $0x80] sm:$0xff]  ;;  %v1209_v33 = vld [vmem:[%s2253_s3 + $0x88] sm:$0xff]  ;;  %v1644_v38 = vpack.c.bf16 %v1193_v31, %v1192_v30  ;;  %v1210_v40 = vld [vmem:[%s2253_s3 + $0x90] sm:$0xff]  ;;  %v1648_v48 = vpack.c.bf16 %v1195_v37, %v1194_v36 }
   0x4   :  { %66 = vperm.xlu1 %1808, %v58_v4   ;;  %61 = vperm.xlu0 %1806, %v57_v5   ;;  %v93_v8 = vadd.s32 8, %v1909_v6  ;;  %v99_v9 = vmul.u32 2654435769, %v1909_v6  ;;  %v101_v10 = vmul.u32 2246822507, %v98_v7  ;;  %v1612_v39 = vpack.c.bf16 %v1209_v33, %v1208_v32  ;;  %v1211_v41 = vld [vmem:[%s2253_s3 + $0x98] sm:$0xff] }
   0x5   :  { %v1196_v42 = vld [vmem:[%s2252_s2 + $0xa0] sm:$0xff]  ;;  %v1197_v43 = vld [vmem:[%s2252_s2 + $0xa8] sm:$0xff]  ;;  %1645 = vmatprep.subr.bf16.mxu1 %v1644_v38  ;;  %v1616_v49 = vpack.c.bf16 %v1211_v41, %v1210_v40  ;;  %v1198_v52 = vld [vmem:[%s2252_s2 + $0xb0] sm:$0xff] }
   0x6   :  { %v100_v11 = vmul.u32 2654435769, %v93_v8  ;;  %v102_v12 = vxor.u32 %v101_v10, %v99_v9  ;;  %v1212_v44 = vld [vmem:[%s2253_s3 + $0xa0] sm:$0xff]  ;;  %v1213_v45 = vld [vmem:[%s2253_s3 + $0xa8] sm:$0xff]  ;;  %1613 = vmatprep.subr.bf16.mxu0 %v1612_v39  ;;  %1647 = vmatpush3.bf16.msra.mxu1 %v1644_v38  ;;  %v1652_v50 = vpack.c.bf16 %v1197_v43, %v1196_v42  ;;  %v1199_v53 = vld [vmem:[%s2252_s2 + $0xb8] sm:$0xff] }
   0x7   :  { %1615 = vmatpush3.bf16.msra.mxu0 %v1612_v39  ;;  %1649 = vmatprep.subr.bf16.mxu1 %v1648_v48  ;;  %v1620_v51 = vpack.c.bf16 %v1213_v45, %v1212_v44  ;;  %v1214_v54 = vld [vmem:[%s2253_s3 + $0xb0] sm:$0xff]  ;;  %v1215_v55 = vld [vmem:[%s2253_s3 + $0xb8] sm:$0xff]  ;;  %v1656_v58 = vpack.c.bf16 %v1199_v53, %v1198_v52  ;;  %v1200_v60 = vld [vmem:[%s2252_s2 + $0xc0] sm:$0xff] }
   0x8   :  { %1809 = vset.pattern.permute.xlu1 %v1872_v13  ;;  %1807 = vset.pattern.permute.xlu0 %v1872_v13  ;;  %v103_v14 = vxor.u32 %v101_v10, %v100_v11  ;;  %v1916_v16 = vxor.u32 %v104_v15, %v102_v12  ;;  %v1624_v59 = vpack.c.bf16 %v1215_v55, %v1214_v54  ;;  %v1201_v61 = vld [vmem:[%s2252_s2 + $0xc8] sm:$0xff]  ;;  %v1216_v62 = vld [vmem:[%s2253_s3 + $0xc0] sm:$0xff]  ;;  %v1218_v7 = vld [vmem:[%s2253_s3 + $0xd0] sm:$0xff] }
   0x9   :  { %80 = vperm.xlu1 %1809, %v58_v4   ;;  %76 = vperm.xlu0 %1807, %v57_v5   ;;  %v1217_v63 = vld [vmem:[%s2253_s3 + $0xc8] sm:$0xff]  ;;  %v1202_v4 = vld [vmem:[%s2252_s2 + $0xd0] sm:$0xff]  ;;  %v1203_v5 = vld [vmem:[%s2252_s2 + $0xd8] sm:$0xff] }
   0xa   :  { %v1918_v17 = vxor.u32 %v104_v15, %v103_v14  ;;  %v107_v18 = vxor.u32 1663821227, %v1916_v16  ;;  %1617 = vmatprep.subr.bf16.mxu0 %v1616_v49  ;;  %1651 = vmatpush3.bf16.msra.mxu1 %v1648_v48  ;;  %v1219_v8 = vld [vmem:[%s2253_s3 + $0xd8] sm:$0xff]  ;;  %v1664_v11 = vpack.c.bf16 %v1203_v5, %v1202_v4  ;;  %v1204_v13 = vld [vmem:[%s2252_s2 + $0xe0] sm:$0xff]  ;;  %v1205_v14 = vld [vmem:[%s2252_s2 + $0xe8] sm:$0xff] }
   0xb   :  { %1619 = vmatpush3.bf16.msra.mxu0 %v1616_v49  ;;  %1653 = vmatprep.subr.bf16.mxu1 %v1652_v50  ;;  %v1632_v12 = vpack.c.bf16 %v1219_v8, %v1218_v7  ;;  %v1220_v15 = vld [vmem:[%s2253_s3 + $0xe0] sm:$0xff] }
   0xc   :  { %v108_v19 = vxor.u32 1663821227, %v1918_v17  ;;  %v109_v20 = vshrl.u32 %v107_v18, 16  ;;  %1621 = vmatprep.subr.bf16.mxu0 %v1620_v51 }
   0xd   :  { %1810 = vset.pattern.permute.xlu1 %v1871_v1  ;;  %42 = vperm.xlu0 %1807, %v21_v3  }
   0xe   :  { %27 = vperm.xlu1 %1810, %v21_v3   ;;  %v110_v21 = vshrl.u32 %v108_v19, 16  ;;  %v111_v22 = vxor.u32 %v109_v20, %v107_v18  ;;  %1655 = vmatpush3.bf16.msra.mxu1 %v1652_v50  ;;  %v1628_v3 = vpack.c.bf16 %v1217_v63, %v1216_v62  ;;  %v1221_v18 = vld [vmem:[%s2253_s3 + $0xe8] sm:$0xff] }
   0xf   :  { %1623 = vmatpush3.bf16.msra.mxu0 %v1620_v51  ;;  %1657 = vmatprep.subr.bf16.mxu1 %v1656_v58 }
  0x10   :  { %v112_v23 = vxor.u32 %v110_v21, %v108_v19  ;;  %v113_v24 = vmul.u32 2246822507, %v111_v22  ;;  %1625 = vmatprep.subr.bf16.mxu0 %v1624_v59  ;;  %v1668_v21 = vpack.c.bf16 %v1205_v14, %v1204_v13  ;;  %v1636_v22 = vpack.c.bf16 %v1221_v18, %v1220_v15 }
  0x11   :  { %46 = vperm.xlu0 %1807, %v22_v2  }
  0x12   :  { %32 = vperm.xlu1 %1810, %v22_v2   ;;  %v114_v25 = vmul.u32 2246822507, %v112_v23  ;;  %v115_v26 = vshrl.u32 %v113_v24, 13  ;;  %v1660_v2 = vpack.c.bf16 %v1201_v61, %v1200_v60  ;;  %1659 = vmatpush3.bf16.msra.mxu1 %v1656_v58  ;;  %v1206_v23 = vld [vmem:[%s2252_s2 + $0xf0] sm:$0xff] }
  0x13   :  { %1627 = vmatpush3.bf16.msra.mxu0 %v1624_v59 }
  0x14   :  { %v116_v27 = vshrl.u32 %v114_v25, 13  ;;  %v117_v28 = vxor.u32 %v115_v26, %v113_v24  ;;  %1661 = vmatprep.subr.bf16.mxu1 %v1660_v2  ;;  %1629 = vmatprep.subr.bf16.mxu0 %v1628_v3  ;;  %v1207_v24 = vld [vmem:[%s2252_s2 + $0xf8] sm:$0xff] }
  0x15   :  { %v1223_v26 = vld [vmem:[%s2253_s3 + $0xf8] sm:$0xff] }
  0x16   :  { %v118_v29 = vxor.u32 %v116_v27, %v114_v25  ;;  %v119_v34 = vmul.u32 3266489909, %v117_v28  ;;  %1663 = vmatpush3.bf16.msra.mxu1 %v1660_v2  ;;  %v1222_v25 = vld [vmem:[%s2253_s3 + $0xf0] sm:$0xff] }
  0x17   :  { %1631 = vmatpush3.bf16.msra.mxu0 %v1628_v3  ;;  %1665 = vmatprep.subr.bf16.mxu1 %v1664_v11  ;;  %v1640_v30 = vpack.c.bf16 %v1223_v26, %v1222_v25 }
  0x18   :  { %v120_v35 = vmul.u32 3266489909, %v118_v29  ;;  %v121_v46 = vshrl.u32 %v119_v34, 16  ;;  %1633 = vmatprep.subr.bf16.mxu0 %v1632_v12  ;;  %v1672_v29 = vpack.c.bf16 %v1207_v24, %v1206_v23 }
  0x1a   :  { %v122_v47 = vshrl.u32 %v120_v35, 16  ;;  %v1970_v56 = vxor.u32 %v121_v46, %v119_v34  ;;  %1667 = vmatpush3.bf16.msra.mxu1 %v1664_v11 }
  0x1b   :  { %1635 = vmatpush3.bf16.msra.mxu0 %v1632_v12  ;;  %1669 = vmatprep.subr.bf16.mxu1 %v1668_v21 }
  0x1c   :  { %v1972_v57 = vxor.u32 %v122_v47, %v120_v35  ;;  %v125_v0 = vxor.u32 1759714724, %v1970_v56  ;;  %1637 = vmatprep.subr.bf16.mxu0 %v1636_v22  ;;  %v143_v43 = vshrl.u32 %v1970_v56, 9 }
  0x1e   :  { %v126_v1 = vxor.u32 1759714724, %v1972_v57  ;;  %v127_v9 = vshrl.u32 %v125_v0, 16  ;;  %1671 = vmatpush3.bf16.msra.mxu1 %v1668_v21  ;;  %v144_v45 = vshrl.u32 %v1972_v57, 9  ;;  %v145_v47 = vcvt.s32.f32 %v143_v43 }
  0x1f   :  { %1639 = vmatpush3.bf16.msra.mxu0 %v1636_v22  ;;  %1673 = vmatprep.subr.bf16.mxu1 %v1672_v29  ;;  %v51_v21 = vsub.s32 1, %v1909_v6  ;;  %v24_v22 = vld [vmem:[%s2253_s3] sm:$0xff] }
  0x20   :  { %v128_v10 = vshrl.u32 %v126_v1, 16  ;;  %v129_v19 = vxor.u32 %v127_v9, %v125_v0  ;;  %1641 = vmatprep.subr.bf16.mxu0 %v1640_v30  ;;  %v146_v49 = vcvt.s32.f32 %v144_v45  ;;  %v147_v51 = vmul.f32 1.1920929e-07, %v145_v47 }
  0x22   :  { %v130_v20 = vxor.u32 %v128_v10, %v126_v1  ;;  %v131_v27 = vmul.u32 2246822507, %v129_v19  ;;  %1675 = vmatpush3.bf16.msra.mxu1 %v1672_v29  ;;  %v148_v53 = vmul.f32 1.1920929e-07, %v146_v49  ;;  %v149_v55 = vadd.f32 5.9604645e-08, %v147_v51 }
  0x23   :  { %1643 = vmatpush3.bf16.msra.mxu0 %v1640_v30 }
  0x24   :  { %v132_v28 = vmul.u32 2246822507, %v130_v20  ;;  %v133_v31 = vshrl.u32 %v131_v27, 13  ;;  %v150_v59 = vadd.f32 5.9604645e-08, %v148_v53  ;;  %1811 = vlog2.f32 %v149_v55 }
  0x25   :  { %v37_v20 = vsub.s32 0, %v1909_v6 }
  0x26   :  { %v134_v32 = vshrl.u32 %v132_v28, 13  ;;  %v135_v33 = vxor.u32 %v133_v31, %v131_v27  ;;  %1813 = vlog2.f32 %v150_v59 }
  0x27   :  { %v72_v27 = vrot.slane %v24_v22, %v37_v20 }
  0x28   :  { %v136_v34 = vxor.u32 %v134_v32, %v132_v28  ;;  %v137_v35 = vmul.u32 3266489909, %v135_v33  ;;  %v86_v28 = vrot.slane %v24_v22, %v51_v21 }
  0x2a   :  { %v138_v36 = vmul.u32 3266489909, %v136_v34  ;;  %v139_v37 = vshrl.u32 %v137_v35, 16 }
  0x2c   :  { %v140_v38 = vshrl.u32 %v138_v36, 16  ;;  %v141_v39 = vxor.u32 %v139_v37, %v137_v35 }
  0x2e   :  { %v142_v40 = vxor.u32 %v140_v38, %v138_v36  ;;  %v151_v41 = vshrl.u32 %v141_v39, 9  ;;  %v1812_v57 = vpop.eup %1811 }
  0x2f   :  { %v160_v3 = vmul.f32 0.6931472, %v1812_v57 }
  0x30   :  { %v152_v42 = vshrl.u32 %v142_v40, 9  ;;  %v153_v44 = vcvt.s32.f32 %v151_v41  ;;  %v1814_v2 = vpop.eup %1813 }
  0x31   :  { %v162_v9 = vmul.f32 0.6931472, %v1814_v2  ;;  %v163_v10 = vmul.f32 -2.0, %v160_v3 }
  0x32   :  { %v154_v46 = vcvt.s32.f32 %v152_v42  ;;  %v155_v48 = vmul.f32 1.1920929e-07, %v153_v44 }
  0x33   :  { %v164_v15 = vmul.f32 -2.0, %v162_v9  ;;  %1815 = vrsqrt.f32 %v163_v10  ;;  %vm167_vm0 = vcmp.eq.f32.partialorder %v163_v10, inf  ;;  %vm169_vm2 = vcmp.eq.f32.partialorder %v163_v10, 0.0 }
  0x34   :  { %v156_v50 = vmul.f32 1.1920929e-07, %v154_v46  ;;  %v157_v52 = vadd.f32 5.9604645e-08, %v155_v48  ;;  %v170_v48 = vand.u32 2147483648, %v163_v10 }
  0x35   :  { %1817 = vrsqrt.f32 %v164_v15  ;;  %vm174_vm1 = vcmp.eq.f32.partialorder %v164_v15, inf  ;;  %v177_v49 = vand.u32 2147483648, %v164_v15  ;;  %vm176_vm3 = vcmp.eq.f32.partialorder %v164_v15, 0.0 }
  0x36   :  { %v158_v54 = vadd.f32 5.9604645e-08, %v156_v50  ;;  %v179_v58 = vadd.f32 0.25, %v157_v52  ;;  %v23_v50 = vld [vmem:[%s2252_s2] sm:$0xff] }
  0x37   :  { %v52_v55 = vrot.slane %v23_v50, %v51_v21 }
  0x38   :  { %v180_v60 = vadd.f32 0.25, %v158_v54  ;;  %v181_v61 = vadd.f32 0.5, %v179_v58 }
  0x3a   :  { %v182_v56 = vadd.f32 0.5, %v180_v60  ;;  %v183_v62 = vfloor.f32 %v181_v61 }
  0x3c   :  { %v184_v63 = vfloor.f32 %v182_v56  ;;  %v185_v0 = vsub.f32 %v179_v58, %v183_v62 }
  0x3d   :  { %v1816_v33 = vpop.eup %1815 }
  0x3e   :  { %v186_v1 = vsub.f32 %v180_v60, %v184_v63  ;;  %v189_v4 = vmul.f32 16.0, %v185_v0  ;;  %v191_v5 = vand.u32 2147483647, %v185_v0  ;;  %v187_v11 = vmul.f32 8.0, %v185_v0 }
  0x3f   :  { %v1818_v6 = vpop.eup %1817  ;;  %v166_v42 = vmul.f32 %v1816_v33, %v163_v10  ;;  %v38_v60 = vrot.slane %v23_v50, %v37_v20  ;;  %v1243_v33 = vld [vmem:[%s2253_s3 + $0x108] sm:$0xff] }
  0x40   :  { %v190_v7 = vmul.f32 16.0, %v186_v1  ;;  %v192_v8 = vand.u32 2147483647, %v186_v1  ;;  %v193_v12 = vmul.f32 %v191_v5, %v189_v4  ;;  %v188_v13 = vmul.f32 8.0, %v186_v1 }
  0x41   :  { %v173_v43 = vmul.f32 %v1818_v6, %v164_v15  ;;  %v168_v51 = vsel %vm167_vm0, %v163_v10, %v166_v42  ;;  %v1229_v6 = vld [vmem:[%s2252_s2 + $0x118] sm:$0xff] }
  0x42   :  { %v194_v14 = vmul.f32 %v192_v8, %v190_v7  ;;  %v195_v18 = vsub.f32 %v187_v11, %v193_v12  ;;  %v171_v58 = vsel %vm169_vm2, %v170_v48, %v168_v51  ;;  %v1247_v48 = vld [vmem:[%s2253_s3 + $0x128] sm:$0xff] }
  0x43   :  { %v175_v52 = vsel %vm174_vm1, %v164_v15, %v173_v43 }
  0x44   :  { %v196_v19 = vsub.f32 %v188_v13, %v194_v14  ;;  %v197_v25 = vand.u32 2147483647, %v195_v18  ;;  %v178_v59 = vsel %vm176_vm3, %v177_v49, %v175_v52  ;;  %v1232_v52 = vld [vmem:[%s2252_s2 + $0x130] sm:$0xff] }
  0x46   :  { %v198_v26 = vand.u32 2147483647, %v196_v19  ;;  %v199_v29 = vmul.f32 %v197_v25, %v195_v18 }
  0x48   :  { %v200_v30 = vmul.f32 %v198_v26, %v196_v19  ;;  %v201_v40 = vsub.f32 %v199_v29, %v195_v18  ;;  %v1226_v29 = vld [vmem:[%s2252_s2 + $0x100] sm:$0xff] }
  0x4a   :  { %v202_v41 = vsub.f32 %v200_v30, %v196_v19  ;;  %v203_v46 = vmul.f32 0.225, %v201_v40  ;;  %v1227_v30 = vld [vmem:[%s2252_s2 + $0x108] sm:$0xff]  ;;  %v1245_v40 = vld [vmem:[%s2253_s3 + $0x118] sm:$0xff] }
  0x4c   :  { %v204_v47 = vmul.f32 0.225, %v202_v41  ;;  %v205_v53 = vadd.f32 %v203_v46, %v195_v18  ;;  %v1191_v18 = vld [vmem:[%s2254_s4] ss:$0 sm:$0xff] }
  0x4e   :  { %v206_v54 = vadd.f32 %v204_v47, %v196_v19  ;;  %v207_v63 = vmul.f32 %v205_v53, %v171_v58  ;;  %v1246_v47 = vld [vmem:[%s2253_s3 + $0x120] sm:$0xff]  ;;  %v1233_v53 = vld [vmem:[%s2252_s2 + $0x138] sm:$0xff] }
  0x4f   :  { %v1684_v50 = vpack.c.bf16 %v1247_v48, %v1246_v47  ;;  %v1249_v58 = vld [vmem:[%s2253_s3 + $0x138] sm:$0xff] }
  0x50   :  { %v208_v57 = vmul.f32 %v206_v54, %v178_v59  ;;  %v1720_v54 = vpack.c.bf16 %v1233_v53, %v1232_v52 }
  0x83   :  { %v62_v23 = vpop.permute.xlu0 %61  ;;  %v67_v24 = vpop.permute.xlu1 %66 }
  0x84   :  { %v73_v34 = vmul.f32 %v72_v27, %v62_v23  ;;  %v74_v35 = vmul.f32 %v72_v27, %v67_v24 }
  0x88   :  { %v81_v31 = vpop.permute.xlu1 %80  ;;  %v77_v32 = vpop.permute.xlu0 %76 }
  0x89   :  { %v88_v36 = vmul.f32 %v86_v28, %v81_v31  ;;  %v87_v37 = vmul.f32 %v86_v28, %v77_v32  ;;  %v1708_v31 = vpack.c.bf16 %v1227_v30, %v1226_v29  ;;  %v1242_v32 = vld [vmem:[%s2253_s3 + $0x100] sm:$0xff] }
  0x8b   :  { %v90_v38 = vadd.f32 %v88_v36, %v74_v35  ;;  %v89_v39 = vadd.f32 %v87_v37, %v73_v34  ;;  %v350_v34 = vxor.u32 3327642454, %v1918_v17  ;;  %1709 = vmatprep.subr.bf16.mxu1 %v1708_v31  ;;  %v1676_v35 = vpack.c.bf16 %v1243_v33, %v1242_v32  ;;  %v1228_v37 = vld [vmem:[%s2252_s2 + $0x110] sm:$0xff] }
  0x8c   :  { %v43_v44 = vpop.permute.xlu0 %42  ;;  %v349_v36 = vxor.u32 3327642454, %v1916_v16 }
  0x8d   :  { %1819 = vrsqrt.f32 %v90_v38  ;;  %v28_v45 = vpop.permute.xlu1 %27  ;;  %v53_v1 = vmul.f32 %v52_v55, %v43_v44  ;;  %vm218_vm4 = vcmp.eq.f32.partialorder %v90_v38, inf  ;;  %v221_v8 = vand.u32 2147483648, %v90_v38  ;;  %1677 = vmatprep.subr.bf16.mxu0 %v1676_v35  ;;  %v1230_v44 = vld [vmem:[%s2252_s2 + $0x120] sm:$0xff] }
  0x8e   :  { %1821 = vrsqrt.f32 %v89_v39  ;;  %v39_v5 = vmul.f32 %v38_v60, %v28_v45  ;;  %vm211_vm5 = vcmp.eq.f32.partialorder %v89_v39, inf  ;;  %v214_v9 = vand.u32 2147483648, %v89_v39  ;;  %v1231_v45 = vld [vmem:[%s2252_s2 + $0x128] sm:$0xff] }
  0x8f   :  { %vm220_vm6 = vcmp.eq.f32.partialorder %v90_v38, 0.0  ;;  %vm213_vm7 = vcmp.eq.f32.partialorder %v89_v39, 0.0  ;;  %v352_v41 = vshrl.u32 %v350_v34, 16  ;;  %v351_v43 = vshrl.u32 %v349_v36, 16 }
  0x90   :  { %v47_v61 = vpop.permute.xlu0 %46  ;;  %v55_v19 = vadd.f32 %v53_v1, %v39_v5  ;;  %v1716_v46 = vpack.c.bf16 %v1231_v45, %v1230_v44  ;;  %v1237_v5 = vld [vmem:[%s2252_s2 + $0x158] sm:$0xff] }
  0x91   :  { %v33_v56 = vpop.permute.xlu1 %32  ;;  %v54_v2 = vmul.f32 %v52_v55, %v47_v61  ;;  %v354_v49 = vxor.u32 %v352_v41, %v350_v34  ;;  %v353_v51 = vxor.u32 %v351_v43, %v349_v36  ;;  %v1248_v55 = vld [vmem:[%s2253_s3 + $0x130] sm:$0xff] }
  0x92   :  { %v40_v4 = vmul.f32 %v38_v60, %v33_v56  ;;  %v1688_v60 = vpack.c.bf16 %v1249_v58, %v1248_v55  ;;  %v1234_v56 = vld [vmem:[%s2252_s2 + $0x140] sm:$0xff] }
  0x93   :  { %v356_v59 = vmul.u32 2246822507, %v354_v49  ;;  %v355_v61 = vmul.u32 2246822507, %v353_v51 }
  0x94   :  { %v56_v14 = vadd.f32 %v54_v2, %v40_v4  ;;  %v1236_v4 = vld [vmem:[%s2252_s2 + $0x150] sm:$0xff] }
  0x95   :  { %v358_v1 = vshrl.u32 %v356_v59, 13 }
  0x97   :  { %v1820_v62 = vpop.eup %1819 }
  0x98   :  { %v1822_v0 = vpop.eup %1821  ;;  %v217_v3 = vmul.f32 %v1820_v62, %v90_v38  ;;  %v1235_v62 = vld [vmem:[%s2252_s2 + $0x148] sm:$0xff] }
  0x99   :  { %v210_v7 = vmul.f32 %v1822_v0, %v89_v39  ;;  %v1251_v0 = vld [vmem:[%s2253_s3 + $0x148] sm:$0xff] }
  0x9a   :  { %v219_v10 = vsel %vm218_vm4, %v90_v38, %v217_v3  ;;  %v1712_v38 = vpack.c.bf16 %v1229_v6, %v1228_v37  ;;  %v357_v3 = vshrl.u32 %v355_v61, 13 }
  0x9b   :  { %v212_v11 = vsel %vm211_vm5, %v89_v39, %v210_v7  ;;  %v222_v12 = vsel %vm220_vm6, %v221_v8, %v219_v10  ;;  %v1244_v39 = vld [vmem:[%s2253_s3 + $0x110] sm:$0xff]  ;;  %v1728_v7 = vpack.c.bf16 %v1237_v5, %v1236_v4  ;;  %v1238_v10 = vld [vmem:[%s2252_s2 + $0x160] sm:$0xff] }
  0x9c   :  { %v215_v13 = vsel %vm213_vm7, %v214_v9, %v212_v11  ;;  %v224_v15 = vmul.f32 %v222_v12, %v208_v57  ;;  %v1680_v42 = vpack.c.bf16 %v1245_v40, %v1244_v39  ;;  %v1250_v57 = vld [vmem:[%s2253_s3 + $0x140] sm:$0xff]  ;;  %v1252_v8 = vld [vmem:[%s2253_s3 + $0x150] sm:$0xff]  ;;  %v1253_v9 = vld [vmem:[%s2253_s3 + $0x158] sm:$0xff]  ;;  %v360_v11 = vxor.u32 %v358_v1, %v356_v59 }
  0x9d   :  { %v223_v20 = vmul.f32 %v215_v13, %v207_v63  ;;  %v1724_v63 = vpack.c.bf16 %v1235_v62, %v1234_v56  ;;  %v1692_v2 = vpack.c.bf16 %v1251_v0, %v1250_v57  ;;  %v1696_v12 = vpack.c.bf16 %v1253_v9, %v1252_v8  ;;  %v1239_v13 = vld [vmem:[%s2252_s2 + $0x168] sm:$0xff] }
  0x9e   :  { %v226_v21 = vadd.f32 %v224_v15, %v56_v14  ;;  %v1254_v14 = vld [vmem:[%s2253_s3 + $0x160] sm:$0xff]  ;;  %v1255_v15 = vld [vmem:[%s2253_s3 + $0x168] sm:$0xff] }
  0x9f   :  { %v225_v22 = vadd.f32 %v223_v20, %v55_v19  ;;  %v1732_v19 = vpack.c.bf16 %v1239_v13, %v1238_v10  ;;  %v1700_v20 = vpack.c.bf16 %v1255_v15, %v1254_v14 }
  0xa0   :  { %v235_v23 = vadd.f32 %v1191_v18, %v226_v21  ;;  %v1240_v21 = vld [vmem:[%s2252_s2 + $0x170] sm:$0xff] }
  0xa1   :  { %v234_v24 = vadd.f32 %v1191_v18, %v225_v22  ;;  %v359_v18 = vxor.u32 %v357_v3, %v355_v61  ;;  %v1241_v22 = vld [vmem:[%s2252_s2 + $0x178] sm:$0xff] }
  0xa2   :  { %1823 = vtanh.f32 %v235_v23  ;;  %v1256_v23 = vld [vmem:[%s2253_s3 + $0x170] sm:$0xff] }
  0xa3   :  { %1825 = vtanh.f32 %v234_v24  ;;  %v1257_v24 = vld [vmem:[%s2253_s3 + $0x178] sm:$0xff] }
  0xac   :  { %v1824_v25 = vpop.eup %1823 }
  0xad   :  { %v1826_v26 = vpop.eup %1825  ;;  %v256_v27 = vmul.f32 %v1824_v25, %v1824_v25 }
  0xae   :  { %1469 = vmatprep.mubr.f32.mxu1 %v1826_v26  ;;  %v255_v28 = vmul.f32 %v1826_v26, %v1826_v26  ;;  %v362_v26 = vmul.u32 3266489909, %v360_v11 }
  0xaf   :  { %1470 = vmatmul.mubr.f32.vlgmr.msra.gmra.mrb[0].mxu1 %v1824_v25  ;;  %v1736_v25 = vpack.c.bf16 %v1241_v22, %v1240_v21 }
  0xb0   :  { %1434 = vmatprep.mubr.f32.mxu0 %v255_v28  ;;  %1711 = vmatpush3.bf16.msra.mxu1 %v1708_v31  ;;  %v361_v28 = vmul.u32 3266489909, %v359_v18  ;;  %v364_v29 = vshrl.u32 %v362_v26, 16 }
  0xb1   :  { %1435 = vmatmul.mubr.f32.vlgmr.msra.gmra.mrb[0].mxu0 %v256_v27  ;;  %1713 = vmatprep.subr.bf16.mxu1 %v1712_v38  ;;  %v1704_v27 = vpack.c.bf16 %v1257_v24, %v1256_v23 }
  0xb2   :  { %1679 = vmatpush3.bf16.msra.mxu0 %v1676_v35  ;;  %v363_v30 = vshrl.u32 %v361_v28, 16  ;;  %v366_v31 = vxor.u32 %v364_v29, %v362_v26 }
  0xb3   :  { %1681 = vmatprep.subr.bf16.mxu0 %v1680_v42 }
  0xb4   :  { %1715 = vmatpush3.bf16.msra.mxu1 %v1712_v38  ;;  %v365_v32 = vxor.u32 %v363_v30, %v361_v28  ;;  %v368_v33 = vxor.u32 1759714724, %v366_v31  ;;  %v386_v52 = vshrl.u32 %v366_v31, 9 }
  0xb5   :  { %1717 = vmatprep.subr.bf16.mxu1 %v1716_v46 }
  0xb6   :  { %1683 = vmatpush3.bf16.msra.mxu0 %v1680_v42  ;;  %v367_v34 = vxor.u32 1759714724, %v365_v32  ;;  %v370_v35 = vshrl.u32 %v368_v33, 16  ;;  %v388_v58 = vcvt.s32.f32 %v386_v52 }
  0xb7   :  { %1685 = vmatprep.subr.bf16.mxu0 %v1684_v50 }
  0xb8   :  { %1719 = vmatpush3.bf16.msra.mxu1 %v1716_v46  ;;  %v369_v36 = vshrl.u32 %v367_v34, 16  ;;  %v372_v37 = vxor.u32 %v370_v35, %v368_v33  ;;  %v390_v56 = vmul.f32 1.1920929e-07, %v388_v58 }
  0xb9   :  { %1721 = vmatprep.subr.bf16.mxu1 %v1720_v54 }
  0xba   :  { %1687 = vmatpush3.bf16.msra.mxu0 %v1684_v50  ;;  %v371_v6 = vxor.u32 %v369_v36, %v367_v34  ;;  %v374_v38 = vmul.u32 2246822507, %v372_v37  ;;  %v392_v0 = vadd.f32 5.9604645e-08, %v390_v56 }
  0xbb   :  { %1689 = vmatprep.subr.bf16.mxu0 %v1688_v60 }
  0xbc   :  { %1723 = vmatpush3.bf16.msra.mxu1 %v1720_v54  ;;  %v373_v39 = vmul.u32 2246822507, %v371_v6  ;;  %v376_v40 = vshrl.u32 %v374_v38, 13  ;;  %v385_v54 = vshrl.u32 %v365_v32, 9  ;;  %1827 = vlog2.f32 %v392_v0 }
  0xbd   :  { %1725 = vmatprep.subr.bf16.mxu1 %v1724_v63 }
  0xbe   :  { %1691 = vmatpush3.bf16.msra.mxu0 %v1688_v60  ;;  %v375_v41 = vshrl.u32 %v373_v39, 13  ;;  %v378_v42 = vxor.u32 %v376_v40, %v374_v38  ;;  %v387_v60 = vcvt.s32.f32 %v385_v54 }
  0xbf   :  { %1693 = vmatprep.subr.bf16.mxu0 %v1692_v2 }
  0xc0   :  { %1727 = vmatpush3.bf16.msra.mxu1 %v1724_v63  ;;  %v377_v43 = vxor.u32 %v375_v41, %v373_v39  ;;  %v380_v44 = vmul.u32 3266489909, %v378_v42  ;;  %v389_v63 = vmul.f32 1.1920929e-07, %v387_v60 }
  0xc1   :  { %1729 = vmatprep.subr.bf16.mxu1 %v1728_v7 }
  0xc2   :  { %1695 = vmatpush3.bf16.msra.mxu0 %v1692_v2  ;;  %v379_v45 = vmul.u32 3266489909, %v377_v43  ;;  %v382_v46 = vshrl.u32 %v380_v44, 16  ;;  %v391_v2 = vadd.f32 5.9604645e-08, %v389_v63 }
  0xc3   :  { %1697 = vmatprep.subr.bf16.mxu0 %v1696_v12 }
  0xc4   :  { %1731 = vmatpush3.bf16.msra.mxu1 %v1728_v7  ;;  %v381_v47 = vshrl.u32 %v379_v45, 16  ;;  %v384_v48 = vxor.u32 %v382_v46, %v380_v44  ;;  %1829 = vlog2.f32 %v391_v2 }
  0xc5   :  { %1733 = vmatprep.subr.bf16.mxu1 %v1732_v19 }
  0xc6   :  { %1699 = vmatpush3.bf16.msra.mxu0 %v1696_v12  ;;  %v383_v49 = vxor.u32 %v381_v47, %v379_v45  ;;  %v394_v50 = vshrl.u32 %v384_v48, 9  ;;  %v1828_v11 = vpop.eup %1827 }
  0xc7   :  { %1701 = vmatprep.subr.bf16.mxu0 %v1700_v20  ;;  %v404_v15 = vmul.f32 0.6931472, %v1828_v11 }
  0xc8   :  { %1735 = vmatpush3.bf16.msra.mxu1 %v1732_v19  ;;  %v393_v51 = vshrl.u32 %v383_v49, 9  ;;  %v396_v53 = vcvt.s32.f32 %v394_v50 }
  0xc9   :  { %1737 = vmatprep.subr.bf16.mxu1 %v1736_v25  ;;  %v406_v23 = vmul.f32 -2.0, %v404_v15  ;;  %v1276_v15 = vld [vmem:[%s2253_s3 + $0x180] sm:$0xff] }
  0xca   :  { %1703 = vmatpush3.bf16.msra.mxu0 %v1700_v20  ;;  %v395_v55 = vcvt.s32.f32 %v393_v51  ;;  %v398_v59 = vmul.f32 1.1920929e-07, %v396_v53 }
  0xcb   :  { %1705 = vmatprep.subr.bf16.mxu0 %v1704_v27  ;;  %1831 = vrsqrt.f32 %v406_v23  ;;  %vm416_vm8 = vcmp.eq.f32.partialorder %v406_v23, inf  ;;  %v419_v43 = vand.u32 2147483648, %v406_v23  ;;  %vm418_vm10 = vcmp.eq.f32.partialorder %v406_v23, 0.0 }
  0xcc   :  { %1739 = vmatpush3.bf16.msra.mxu1 %v1736_v25  ;;  %v397_v61 = vmul.f32 1.1920929e-07, %v395_v55  ;;  %v400_v62 = vadd.f32 5.9604645e-08, %v398_v59 }
  0xce   :  { %1707 = vmatpush3.bf16.msra.mxu0 %v1704_v27  ;;  %v399_v57 = vadd.f32 5.9604645e-08, %v397_v61  ;;  %v422_v1 = vadd.f32 0.25, %v400_v62  ;;  %v1830_v12 = vpop.eup %1829 }
  0xcf   :  { %v402_v20 = vmul.f32 0.6931472, %v1830_v12  ;;  %v1260_v12 = vld [vmem:[%s2252_s2 + $0x180] sm:$0xff] }
  0xd0   :  { %v421_v3 = vadd.f32 0.25, %v399_v57  ;;  %v424_v4 = vadd.f32 0.5, %v422_v1 }
  0xd1   :  { %v405_v26 = vmul.f32 -2.0, %v402_v20 }
  0xd2   :  { %v423_v5 = vadd.f32 0.5, %v421_v3  ;;  %v426_v7 = vfloor.f32 %v424_v4 }
  0xd3   :  { %1833 = vrsqrt.f32 %v405_v26  ;;  %vm409_vm9 = vcmp.eq.f32.partialorder %v405_v26, inf  ;;  %v412_v46 = vand.u32 2147483648, %v405_v26  ;;  %vm411_vm11 = vcmp.eq.f32.partialorder %v405_v26, 0.0 }
  0xd4   :  { %v425_v8 = vfloor.f32 %v423_v5  ;;  %v428_v9 = vsub.f32 %v422_v1, %v426_v7  ;;  %v1225_v1 = vld [vmem:[%s2254_s4 + $0x1] ss:$0 sm:$0xff] }
  0xd5   :  { %v1832_v34 = vpop.eup %1831 }
  0xd6   :  { %v427_v10 = vsub.f32 %v421_v3, %v425_v8  ;;  %v432_v13 = vmul.f32 16.0, %v428_v9  ;;  %v434_v14 = vand.u32 2147483647, %v428_v9  ;;  %v430_v21 = vmul.f32 8.0, %v428_v9 }
  0xd7   :  { %v415_v40 = vmul.f32 %v1832_v34, %v406_v23  ;;  %v1281_v34 = vld [vmem:[%s2253_s3 + $0x1a8] sm:$0xff] }
  0xd8   :  { %v431_v18 = vmul.f32 16.0, %v427_v10  ;;  %v433_v19 = vand.u32 2147483647, %v427_v10  ;;  %v436_v22 = vmul.f32 %v434_v14, %v432_v13  ;;  %v429_v24 = vmul.f32 8.0, %v427_v10  ;;  %v1261_v13 = vld [vmem:[%s2252_s2 + $0x188] sm:$0xff] }
  0xd9   :  { %v417_v45 = vsel %vm416_vm8, %v406_v23, %v415_v40  ;;  %v1772_v14 = vpack.c.bf16 %v1261_v13, %v1260_v12  ;;  %v1263_v23 = vld [vmem:[%s2252_s2 + $0x198] sm:$0xff]  ;;  %v1282_v40 = vld [vmem:[%s2253_s3 + $0x1b0] sm:$0xff] }
  0xda   :  { %v435_v25 = vmul.f32 %v433_v19, %v431_v18  ;;  %v438_v27 = vsub.f32 %v430_v21, %v436_v22  ;;  %v420_v49 = vsel %vm418_vm10, %v419_v43, %v417_v45  ;;  %v1277_v18 = vld [vmem:[%s2253_s3 + $0x188] sm:$0xff]  ;;  %v666_v19 = vxor.u32 696496385, %v1918_v17  ;;  %v1262_v22 = vld [vmem:[%s2252_s2 + $0x190] sm:$0xff]  ;;  %v1268_v45 = vld [vmem:[%s2252_s2 + $0x1c0] sm:$0xff] }
  0xdb   :  { %1773 = vmatprep.subr.bf16.mxu1 %v1772_v14  ;;  %v1740_v20 = vpack.c.bf16 %v1277_v18, %v1276_v15  ;;  %v665_v21 = vxor.u32 696496385, %v1916_v16 }
  0xdc   :  { %v437_v28 = vsub.f32 %v429_v24, %v435_v25  ;;  %v440_v29 = vand.u32 2147483647, %v438_v27  ;;  %v1776_v24 = vpack.c.bf16 %v1263_v23, %v1262_v22  ;;  %v1278_v25 = vld [vmem:[%s2253_s3 + $0x190] sm:$0xff] }
  0xdd   :  { %v1834_v36 = vpop.eup %1833  ;;  %1741 = vmatprep.subr.bf16.mxu0 %v1740_v20 }
  0xde   :  { %v439_v30 = vand.u32 2147483647, %v437_v28  ;;  %v442_v31 = vmul.f32 %v440_v29, %v438_v27  ;;  %v408_v41 = vmul.f32 %v1834_v36, %v405_v26  ;;  %v667_v29 = vshrl.u32 %v665_v21, 16 }
  0xe0   :  { %v441_v32 = vmul.f32 %v439_v30, %v437_v28  ;;  %v444_v6 = vsub.f32 %v442_v31, %v438_v27  ;;  %v410_v47 = vsel %vm409_vm9, %v405_v26, %v408_v41  ;;  %v1279_v26 = vld [vmem:[%s2253_s3 + $0x198] sm:$0xff]  ;;  %v1264_v30 = vld [vmem:[%s2252_s2 + $0x1a0] sm:$0xff]  ;;  %v1265_v31 = vld [vmem:[%s2252_s2 + $0x1a8] sm:$0xff] }
  0xe1   :  { %v413_v51 = vsel %vm411_vm11, %v412_v46, %v410_v47  ;;  %v1283_v41 = vld [vmem:[%s2253_s3 + $0x1b8] sm:$0xff]  ;;  %v1269_v46 = vld [vmem:[%s2252_s2 + $0x1c8] sm:$0xff] }
  0xe2   :  { %v443_v39 = vsub.f32 %v441_v32, %v437_v28  ;;  %v446_v42 = vmul.f32 0.225, %v444_v6  ;;  %v1780_v32 = vpack.c.bf16 %v1265_v31, %v1264_v30  ;;  %v1266_v6 = vld [vmem:[%s2252_s2 + $0x1b0] sm:$0xff]  ;;  %v1752_v43 = vpack.c.bf16 %v1283_v41, %v1282_v40 }
  0xe3   :  { %v1788_v47 = vpack.c.bf16 %v1269_v46, %v1268_v45 }
  0xe4   :  { %v445_v44 = vmul.f32 0.225, %v443_v39  ;;  %v448_v48 = vadd.f32 %v446_v42, %v438_v27  ;;  %v668_v27 = vshrl.u32 %v666_v19, 16 }
  0xe6   :  { %v447_v50 = vadd.f32 %v445_v44, %v437_v28  ;;  %v450_v54 = vmul.f32 %v448_v48, %v420_v49  ;;  %v1744_v28 = vpack.c.bf16 %v1279_v26, %v1278_v25  ;;  %v1284_v48 = vld [vmem:[%s2253_s3 + $0x1c0] sm:$0xff]  ;;  %v1285_v49 = vld [vmem:[%s2253_s3 + $0x1c8] sm:$0xff] }
  0xe8   :  { %v449_v59 = vmul.f32 %v447_v50, %v413_v51  ;;  %v1756_v51 = vpack.c.bf16 %v1285_v49, %v1284_v48 }
 0x182   :  { %v1471_v33 = vpop.f32.mrb[0].mxu1 }
 0x183   :  { %v533_v35 = vpop.f32.mrb[1].mxu1 }
 0x184   :  { %v1436_v37 = vpop.f32.mrb[0].mxu0 }
 0x185   :  { %1835 = vrsqrt.f32 %v1436_v37  ;;  %v340_v38 = vpop.f32.mrb[1].mxu0  ;;  %vm460_vm12 = vcmp.eq.f32.partialorder %v1436_v37, inf  ;;  %v463_v58 = vand.u32 2147483648, %v1436_v37  ;;  %vm462_vm13 = vcmp.eq.f32.partialorder %v1436_v37, 0.0 }
 0x186   :  { %1837 = vrsqrt.f32 %v340_v38  ;;  %vm453_vm14 = vcmp.eq.f32.partialorder %v340_v38, inf  ;;  %v456_v56 = vand.u32 2147483648, %v340_v38  ;;  %vm455_vm15 = vcmp.eq.f32.partialorder %v340_v38, 0.0 }
 0x18f   :  { %v1836_v52 = vpop.eup %1835 }
 0x190   :  { %v1838_v53 = vpop.eup %1837  ;;  %v459_v55 = vmul.f32 %v1836_v52, %v1436_v37 }
 0x191   :  { %v452_v60 = vmul.f32 %v1838_v53, %v340_v38  ;;  %v1270_v53 = vld [vmem:[%s2252_s2 + $0x1d0] sm:$0xff] }
 0x192   :  { %v461_v61 = vsel %vm460_vm12, %v1436_v37, %v459_v55  ;;  %v669_v37 = vxor.u32 %v667_v29, %v665_v21 }
 0x193   :  { %v464_v62 = vsel %vm462_vm13, %v463_v58, %v461_v61  ;;  %v454_v63 = vsel %vm453_vm14, %v340_v38, %v452_v60  ;;  %v1267_v38 = vld [vmem:[%s2252_s2 + $0x1b8] sm:$0xff]  ;;  %v1286_v58 = vld [vmem:[%s2253_s3 + $0x1d0] sm:$0xff]  ;;  %v1272_v60 = vld [vmem:[%s2252_s2 + $0x1e0] sm:$0xff] }
 0x194   :  { %v466_v57 = vmul.f32 %v464_v62, %v450_v54  ;;  %v457_v0 = vsel %vm455_vm15, %v456_v56, %v454_v63  ;;  %v1784_v39 = vpack.c.bf16 %v1267_v38, %v1266_v6  ;;  %v671_v44 = vmul.u32 2246822507, %v669_v37  ;;  %v1271_v54 = vld [vmem:[%s2252_s2 + $0x1d8] sm:$0xff]  ;;  %v1273_v62 = vld [vmem:[%s2252_s2 + $0x1e8] sm:$0xff]  ;;  %v1288_v63 = vld [vmem:[%s2253_s3 + $0x1e0] sm:$0xff] }
 0x195   :  { %v465_v2 = vmul.f32 %v457_v0, %v449_v59  ;;  %v1792_v55 = vpack.c.bf16 %v1271_v54, %v1270_v53  ;;  %v1287_v59 = vld [vmem:[%s2253_s3 + $0x1d8] sm:$0xff] }
 0x196   :  { %v539_v3 = vadd.f32 %v1471_v33, %v466_v57  ;;  %v1280_v33 = vld [vmem:[%s2253_s3 + $0x1a0] sm:$0xff]  ;;  %v673_v52 = vshrl.u32 %v671_v44, 13  ;;  %v1760_v56 = vpack.c.bf16 %v1287_v59, %v1286_v58  ;;  %v1289_v57 = vld [vmem:[%s2253_s3 + $0x1e8] sm:$0xff] }
 0x197   :  { %v534_v4 = vadd.f32 %v533_v35, %v465_v2  ;;  %v670_v35 = vxor.u32 %v668_v27, %v666_v19  ;;  %v1748_v36 = vpack.c.bf16 %v1281_v34, %v1280_v33  ;;  %v1764_v2 = vpack.c.bf16 %v1289_v57, %v1288_v63 }
 0x198   :  { %v551_v5 = vadd.f32 %v1225_v1, %v539_v3  ;;  %v675_v0 = vxor.u32 %v673_v52, %v671_v44  ;;  %v1274_v3 = vld [vmem:[%s2252_s2 + $0x1f0] sm:$0xff] }
 0x199   :  { %v550_v7 = vadd.f32 %v1225_v1, %v534_v4  ;;  %v672_v42 = vmul.u32 2246822507, %v670_v35  ;;  %v1796_v1 = vpack.c.bf16 %v1273_v62, %v1272_v60  ;;  %v1275_v4 = vld [vmem:[%s2252_s2 + $0x1f8] sm:$0xff] }
 0x19a   :  { %1839 = vtanh.f32 %v551_v5  ;;  %v1290_v5 = vld [vmem:[%s2253_s3 + $0x1f0] sm:$0xff] }
 0x19b   :  { %1841 = vtanh.f32 %v550_v7  ;;  %v674_v50 = vshrl.u32 %v672_v42, 13  ;;  %v1291_v7 = vld [vmem:[%s2253_s3 + $0x1f8] sm:$0xff] }
 0x19d   :  { %v676_v61 = vxor.u32 %v674_v50, %v672_v42 }
 0x1a4   :  { %v1840_v8 = vpop.eup %1839 }
 0x1a5   :  { %v1842_v9 = vpop.eup %1841  ;;  %v572_v11 = vmul.f32 %v1840_v8, %v1840_v8 }
 0x1a6   :  { %1539 = vmatprep.mubr.f32.mxu1 %v1842_v9  ;;  %v571_v10 = vmul.f32 %v1842_v9, %v1842_v9  ;;  %v678_v9 = vmul.u32 3266489909, %v676_v61 }
 0x1a7   :  { %1540 = vmatmul.mubr.f32.vlgmr.msra.gmra.mrb[2].mxu1 %v1840_v8  ;;  %v1800_v8 = vpack.c.bf16 %v1275_v4, %v1274_v3 }
 0x1a8   :  { %1504 = vmatprep.mubr.f32.mxu0 %v571_v10  ;;  %1775 = vmatpush3.bf16.msra.mxu1 %v1772_v14  ;;  %v1768_v10 = vpack.c.bf16 %v1291_v7, %v1290_v5  ;;  %v680_v12 = vshrl.u32 %v678_v9, 16 }
 0x1a9   :  { %1505 = vmatmul.mubr.f32.vlgmr.msra.gmra.mrb[2].mxu0 %v572_v11  ;;  %1777 = vmatprep.subr.bf16.mxu1 %v1776_v24  ;;  %v677_v11 = vmul.u32 3266489909, %v675_v0 }
 0x1aa   :  { %1743 = vmatpush3.bf16.msra.mxu0 %v1740_v20  ;;  %v682_v14 = vxor.u32 %v680_v12, %v678_v9 }
 0x1ab   :  { %1745 = vmatprep.subr.bf16.mxu0 %v1744_v28  ;;  %v679_v13 = vshrl.u32 %v677_v11, 16 }
 0x1ac   :  { %1779 = vmatpush3.bf16.msra.mxu1 %v1776_v24  ;;  %v684_v18 = vxor.u32 1759714724, %v682_v14  ;;  %v702_v6 = vshrl.u32 %v682_v14, 9 }
 0x1ad   :  { %1781 = vmatprep.subr.bf16.mxu1 %v1780_v32  ;;  %v681_v15 = vxor.u32 %v679_v13, %v677_v11 }
 0x1ae   :  { %1747 = vmatpush3.bf16.msra.mxu0 %v1744_v28  ;;  %v686_v20 = vshrl.u32 %v684_v18, 16  ;;  %v704_v41 = vcvt.s32.f32 %v702_v6 }
 0x1af   :  { %1749 = vmatprep.subr.bf16.mxu0 %v1748_v36  ;;  %v683_v19 = vxor.u32 1759714724, %v681_v15 }
 0x1b0   :  { %1783 = vmatpush3.bf16.msra.mxu1 %v1780_v32  ;;  %v688_v22 = vxor.u32 %v686_v20, %v684_v18  ;;  %v706_v45 = vmul.f32 1.1920929e-07, %v704_v41 }
 0x1b1   :  { %1785 = vmatprep.subr.bf16.mxu1 %v1784_v39  ;;  %v685_v21 = vshrl.u32 %v683_v19, 16 }
 0x1b2   :  { %1751 = vmatpush3.bf16.msra.mxu0 %v1748_v36  ;;  %v690_v24 = vmul.u32 2246822507, %v688_v22  ;;  %v708_v49 = vadd.f32 5.9604645e-08, %v706_v45 }
 0x1b3   :  { %1753 = vmatprep.subr.bf16.mxu0 %v1752_v43  ;;  %v687_v23 = vxor.u32 %v685_v21, %v683_v19 }
 0x1b4   :  { %1787 = vmatpush3.bf16.msra.mxu1 %v1784_v39  ;;  %v692_v26 = vshrl.u32 %v690_v24, 13  ;;  %v701_v39 = vshrl.u32 %v681_v15, 9  ;;  %1843 = vlog2.f32 %v708_v49 }
 0x1b5   :  { %1789 = vmatprep.subr.bf16.mxu1 %v1788_v47  ;;  %v689_v25 = vmul.u32 2246822507, %v687_v23 }
 0x1b6   :  { %1755 = vmatpush3.bf16.msra.mxu0 %v1752_v43  ;;  %v694_v28 = vxor.u32 %v692_v26, %v690_v24  ;;  %v703_v43 = vcvt.s32.f32 %v701_v39 }
 0x1b7   :  { %1757 = vmatprep.subr.bf16.mxu0 %v1756_v51  ;;  %v691_v27 = vshrl.u32 %v689_v25, 13 }
 0x1b8   :  { %1791 = vmatpush3.bf16.msra.mxu1 %v1788_v47  ;;  %v696_v30 = vmul.u32 3266489909, %v694_v28  ;;  %v705_v47 = vmul.f32 1.1920929e-07, %v703_v43 }
 0x1b9   :  { %1793 = vmatprep.subr.bf16.mxu1 %v1792_v55  ;;  %v693_v29 = vxor.u32 %v691_v27, %v689_v25 }
 0x1ba   :  { %1759 = vmatpush3.bf16.msra.mxu0 %v1756_v51  ;;  %v698_v32 = vshrl.u32 %v696_v30, 16  ;;  %v707_v51 = vadd.f32 5.9604645e-08, %v705_v47 }
 0x1bb   :  { %1761 = vmatprep.subr.bf16.mxu0 %v1760_v56  ;;  %v695_v31 = vmul.u32 3266489909, %v693_v29 }
 0x1bc   :  { %1795 = vmatpush3.bf16.msra.mxu1 %v1792_v55  ;;  %v700_v34 = vxor.u32 %v698_v32, %v696_v30  ;;  %1845 = vlog2.f32 %v707_v51 }
 0x1bd   :  { %1797 = vmatprep.subr.bf16.mxu1 %v1796_v1  ;;  %v697_v33 = vshrl.u32 %v695_v31, 16 }
 0x1be   :  { %1763 = vmatpush3.bf16.msra.mxu0 %v1760_v56  ;;  %v710_v36 = vshrl.u32 %v700_v34, 9  ;;  %v1844_v61 = vpop.eup %1843 }
 0x1bf   :  { %1765 = vmatprep.subr.bf16.mxu0 %v1764_v2  ;;  %v699_v35 = vxor.u32 %v697_v33, %v695_v31  ;;  %v720_v57 = vmul.f32 0.6931472, %v1844_v61 }
 0x1c0   :  { %1799 = vmatpush3.bf16.msra.mxu1 %v1796_v1  ;;  %v712_v38 = vcvt.s32.f32 %v710_v36 }
 0x1c1   :  { %1801 = vmatprep.subr.bf16.mxu1 %v1800_v8  ;;  %v709_v37 = vshrl.u32 %v699_v35, 9  ;;  %v722_v5 = vmul.f32 -2.0, %v720_v57 }
 0x1c2   :  { %1767 = vmatpush3.bf16.msra.mxu0 %v1764_v2  ;;  %v714_v42 = vmul.f32 1.1920929e-07, %v712_v38 }
 0x1c3   :  { %1769 = vmatprep.subr.bf16.mxu0 %v1768_v10  ;;  %v711_v40 = vcvt.s32.f32 %v709_v37  ;;  %1847 = vrsqrt.f32 %v722_v5  ;;  %vm732_vm0 = vcmp.eq.f32.partialorder %v722_v5, inf  ;;  %v735_v29 = vand.u32 2147483648, %v722_v5 }
 0x1c4   :  { %1803 = vmatpush3.bf16.msra.mxu1 %v1800_v8  ;;  %v716_v46 = vadd.f32 5.9604645e-08, %v714_v42  ;;  %vm734_vm2 = vcmp.eq.f32.partialorder %v722_v5, 0.0 }
 0x1c5   :  { %v713_v44 = vmul.f32 1.1920929e-07, %v711_v40 }
 0x1c6   :  { %1771 = vmatpush3.bf16.msra.mxu0 %v1768_v10  ;;  %v738_v50 = vadd.f32 0.25, %v716_v46  ;;  %v1846_v56 = vpop.eup %1845 }
 0x1c7   :  { %v715_v48 = vadd.f32 5.9604645e-08, %v713_v44  ;;  %v718_v2 = vmul.f32 0.6931472, %v1846_v56  ;;  %v982_v56 = vxor.u32 2360317612, %v1918_v17 }
 0x1c8   :  { %v740_v53 = vadd.f32 0.5, %v738_v50 }
 0x1c9   :  { %v737_v52 = vadd.f32 0.25, %v715_v48  ;;  %v721_v9 = vmul.f32 -2.0, %v718_v2 }
 0x1ca   :  { %v742_v55 = vfloor.f32 %v740_v53 }
 0x1cb   :  { %v739_v54 = vadd.f32 0.5, %v737_v52  ;;  %1849 = vrsqrt.f32 %v721_v9  ;;  %vm725_vm1 = vcmp.eq.f32.partialorder %v721_v9, inf  ;;  %v728_v32 = vand.u32 2147483648, %v721_v9 }
 0x1cc   :  { %v744_v59 = vsub.f32 %v738_v50, %v742_v55  ;;  %vm727_vm3 = vcmp.eq.f32.partialorder %v721_v9, 0.0  ;;  %v1259_v50 = vld [vmem:[%s2254_s4 + $0x2] ss:$0 sm:$0xff] }
 0x1cd   :  { %v741_v58 = vfloor.f32 %v739_v54  ;;  %v1848_v19 = vpop.eup %1847 }
 0x1ce   :  { %v748_v62 = vmul.f32 16.0, %v744_v59  ;;  %v750_v63 = vand.u32 2147483647, %v744_v59  ;;  %v746_v3 = vmul.f32 8.0, %v744_v59  ;;  %v731_v26 = vmul.f32 %v1848_v19, %v722_v5 }
 0x1cf   :  { %v743_v60 = vsub.f32 %v737_v52, %v741_v58 }
 0x1d0   :  { %v752_v4 = vmul.f32 %v750_v63, %v748_v62  ;;  %v733_v31 = vsel %vm732_vm0, %v722_v5, %v731_v26  ;;  %v981_v62 = vxor.u32 2360317612, %v1916_v16  ;;  %v984_v63 = vshrl.u32 %v982_v56, 16 }
 0x1d1   :  { %v747_v0 = vmul.f32 16.0, %v743_v60  ;;  %v749_v1 = vand.u32 2147483647, %v743_v60  ;;  %v745_v7 = vmul.f32 8.0, %v743_v60  ;;  %v736_v35 = vsel %vm734_vm2, %v735_v29, %v733_v31 }
 0x1d2   :  { %v754_v10 = vsub.f32 %v746_v3, %v752_v4  ;;  %v983_v57 = vshrl.u32 %v981_v62, 16  ;;  %vm1184_vm0 = vcmask 7168  }
 0x1d3   :  { %v751_v8 = vmul.f32 %v749_v1, %v747_v0  ;;  %v986_v0 = vxor.u32 %v984_v63, %v982_v56 }
 0x1d4   :  { %v756_v12 = vand.u32 2147483647, %v754_v10  ;;  %v985_v1 = vxor.u32 %v983_v57, %v981_v62 }
 0x1d5   :  { %v753_v11 = vsub.f32 %v745_v7, %v751_v8  ;;  %v1850_v21 = vpop.eup %1849  ;;  %v988_v2 = vmul.u32 2246822507, %v986_v0 }
 0x1d6   :  { %v758_v14 = vmul.f32 %v756_v12, %v754_v10  ;;  %v724_v27 = vmul.f32 %v1850_v21, %v721_v9  ;;  %v987_v3 = vmul.u32 2246822507, %v985_v1 }
 0x1d7   :  { %v755_v13 = vand.u32 2147483647, %v753_v11  ;;  %v990_v4 = vshrl.u32 %v988_v2, 13 }
 0x1d8   :  { %v760_v23 = vsub.f32 %v758_v14, %v754_v10  ;;  %v726_v33 = vsel %vm725_vm1, %v721_v9, %v724_v27  ;;  %v989_v5 = vshrl.u32 %v987_v3, 13 }
 0x1d9   :  { %v757_v15 = vmul.f32 %v755_v13, %v753_v11  ;;  %v729_v37 = vsel %vm727_vm3, %v728_v32, %v726_v33  ;;  %v992_v7 = vxor.u32 %v990_v4, %v988_v2 }
 0x1da   :  { %v762_v28 = vmul.f32 0.225, %v760_v23  ;;  %v991_v8 = vxor.u32 %v989_v5, %v987_v3 }
 0x1db   :  { %v759_v25 = vsub.f32 %v757_v15, %v753_v11  ;;  %v994_v9 = vmul.u32 3266489909, %v992_v7 }
 0x1dc   :  { %v764_v34 = vadd.f32 %v762_v28, %v754_v10  ;;  %v993_v10 = vmul.u32 3266489909, %v991_v8 }
 0x1dd   :  { %v761_v30 = vmul.f32 0.225, %v759_v25 }
 0x1de   :  { %v766_v39 = vmul.f32 %v764_v34, %v736_v35  ;;  %v995_v12 = vshrl.u32 %v993_v10, 16 }
 0x1df   :  { %v763_v36 = vadd.f32 %v761_v30, %v753_v11  ;;  %v996_v11 = vshrl.u32 %v994_v9, 16 }
 0x1e0   :  { %v997_v14 = vxor.u32 %v995_v12, %v993_v10 }
 0x1e1   :  { %v765_v42 = vmul.f32 %v763_v36, %v729_v37  ;;  %v998_v13 = vxor.u32 %v996_v11, %v994_v9 }
 0x1e2   :  { %v999_v17 = vxor.u32 1759714724, %v997_v14  ;;  %v1017_v37 = vshrl.u32 %v997_v14, 9 }
 0x1e3   :  { %v1000_v15 = vxor.u32 1759714724, %v998_v13  ;;  %v1018_v35 = vshrl.u32 %v998_v13, 9 }
 0x1e4   :  { %v1001_v16 = vshrl.u32 %v999_v17, 16 }
 0x27a   :  { %v1541_v18 = vpop.f32.mrb[2].mxu1 }
 0x27b   :  { %v849_v20 = vpop.f32.mrb[3].mxu1 }
 0x27c   :  { %v1506_v22 = vpop.f32.mrb[2].mxu0 }
 0x27d   :  { %1851 = vrsqrt.f32 %v1506_v22  ;;  %v656_v24 = vpop.f32.mrb[3].mxu0  ;;  %vm776_vm4 = vcmp.eq.f32.partialorder %v1506_v22, inf  ;;  %v779_v41 = vand.u32 2147483648, %v1506_v22  ;;  %vm778_vm5 = vcmp.eq.f32.partialorder %v1506_v22, 0.0 }
 0x27e   :  { %1853 = vrsqrt.f32 %v656_v24  ;;  %vm769_vm6 = vcmp.eq.f32.partialorder %v656_v24, inf  ;;  %v772_v45 = vand.u32 2147483648, %v656_v24  ;;  %vm771_vm7 = vcmp.eq.f32.partialorder %v656_v24, 0.0 }
 0x287   :  { %v1852_v6 = vpop.eup %1851 }
 0x288   :  { %v1854_v38 = vpop.eup %1853  ;;  %v775_v40 = vmul.f32 %v1852_v6, %v1506_v22 }
 0x289   :  { %v768_v43 = vmul.f32 %v1854_v38, %v656_v24  ;;  %v1020_v38 = vcvt.s32.f32 %v1018_v35 }
 0x28a   :  { %v777_v44 = vsel %vm776_vm4, %v1506_v22, %v775_v40  ;;  %v1019_v40 = vcvt.s32.f32 %v1017_v37 }
 0x28b   :  { %v780_v46 = vsel %vm778_vm5, %v779_v41, %v777_v44  ;;  %v770_v47 = vsel %vm769_vm6, %v656_v24, %v768_v43 }
 0x28c   :  { %v782_v48 = vmul.f32 %v780_v46, %v766_v39  ;;  %v773_v49 = vsel %vm771_vm7, %v772_v45, %v770_v47  ;;  %v1021_v44 = vmul.f32 1.1920929e-07, %v1019_v40 }
 0x28d   :  { %v781_v51 = vmul.f32 %v773_v49, %v765_v42  ;;  %v1022_v42 = vmul.f32 1.1920929e-07, %v1020_v38 }
 0x28e   :  { %v855_v52 = vadd.f32 %v1541_v18, %v782_v48  ;;  %v1002_v18 = vshrl.u32 %v1000_v15, 16  ;;  %v1023_v48 = vadd.f32 5.9604645e-08, %v1021_v44 }
 0x28f   :  { %v850_v53 = vadd.f32 %v849_v20, %v781_v51  ;;  %v1003_v20 = vxor.u32 %v1001_v16, %v999_v17  ;;  %v1024_v46 = vadd.f32 5.9604645e-08, %v1022_v42 }
 0x290   :  { %v867_v54 = vadd.f32 %v1259_v50, %v855_v52  ;;  %v1004_v19 = vxor.u32 %v1002_v18, %v1000_v15 }
 0x291   :  { %v866_v55 = vadd.f32 %v1259_v50, %v850_v53  ;;  %v1005_v22 = vmul.u32 2246822507, %v1003_v20 }
 0x292   :  { %1855 = vtanh.f32 %v867_v54  ;;  %v1006_v21 = vmul.u32 2246822507, %v1004_v19 }
 0x293   :  { %1857 = vtanh.f32 %v866_v55  ;;  %v1007_v24 = vshrl.u32 %v1005_v22, 13 }
 0x294   :  { %v1008_v23 = vshrl.u32 %v1006_v21, 13  ;;  %1859 = vlog2.f32 %v1024_v46 }
 0x295   :  { %v1009_v26 = vxor.u32 %v1007_v24, %v1005_v22  ;;  %1861 = vlog2.f32 %v1023_v48 }
 0x296   :  { %v1010_v25 = vxor.u32 %v1008_v23, %v1006_v21 }
 0x297   :  { %v1011_v28 = vmul.u32 3266489909, %v1009_v26 }
 0x298   :  { %v1012_v27 = vmul.u32 3266489909, %v1010_v25 }
 0x299   :  { %v1013_v30 = vshrl.u32 %v1011_v28, 16 }
 0x29a   :  { %v1014_v29 = vshrl.u32 %v1012_v27, 16 }
 0x29b   :  { %v1015_v32 = vxor.u32 %v1013_v30, %v1011_v28 }
 0x29c   :  { %v1856_v58 = vpop.eup %1855  ;;  %v1016_v31 = vxor.u32 %v1014_v29, %v1012_v27 }
 0x29d   :  { %v1858_v59 = vpop.eup %1857  ;;  %v888_v61 = vmul.f32 %v1856_v58, %v1856_v58  ;;  %v1025_v34 = vshrl.u32 %v1015_v32, 9 }
 0x29e   :  { %1609 = vmatprep.mubr.f32.mxu1 %v1858_v59  ;;  %v887_v60 = vmul.f32 %v1858_v59, %v1858_v59  ;;  %v1026_v33 = vshrl.u32 %v1016_v31, 9 }
 0x29f   :  { %1610 = vmatmul.mubr.f32.vlgmr.msra.gmra.mrb[4].mxu1 %v1856_v58  ;;  %v1027_v6 = vcvt.s32.f32 %v1025_v34  ;;  %v1860_v58 = vpop.eup %1859 }
 0x2a0   :  { %1574 = vmatprep.mubr.f32.mxu0 %v887_v60  ;;  %v1028_v36 = vcvt.s32.f32 %v1026_v33  ;;  %v1862_v59 = vpop.eup %1861  ;;  %v1036_v56 = vmul.f32 0.6931472, %v1860_v58 }
 0x2a1   :  { %1575 = vmatmul.mubr.f32.vlgmr.msra.gmra.mrb[4].mxu0 %v888_v61  ;;  %v1029_v41 = vmul.f32 1.1920929e-07, %v1027_v6  ;;  %v1034_v57 = vmul.f32 0.6931472, %v1862_v59 }
 0x2a2   :  { %v1030_v39 = vmul.f32 1.1920929e-07, %v1028_v36  ;;  %v1038_v2 = vmul.f32 -2.0, %v1036_v56 }
 0x2a3   :  { %v1031_v45 = vadd.f32 5.9604645e-08, %v1029_v41  ;;  %v1037_v5 = vmul.f32 -2.0, %v1034_v57 }
 0x2a4   :  { %v1032_v43 = vadd.f32 5.9604645e-08, %v1030_v39  ;;  %1863 = vrsqrt.f32 %v1038_v2  ;;  %vm1048_vm8 = vcmp.eq.f32.partialorder %v1038_v2, inf  ;;  %v1051_v24 = vand.u32 2147483648, %v1038_v2 }
 0x2a5   :  { %v1053_v49 = vadd.f32 0.25, %v1031_v45  ;;  %1865 = vrsqrt.f32 %v1037_v5  ;;  %vm1041_vm9 = vcmp.eq.f32.partialorder %v1037_v5, inf  ;;  %vm1050_vm10 = vcmp.eq.f32.partialorder %v1038_v2, 0.0  ;;  %v1293_v45 = vld [vmem:[%s2254_s4 + $0x3] ss:$0 sm:$0xff] }
 0x2a6   :  { %v1054_v47 = vadd.f32 0.25, %v1032_v43  ;;  %v1044_v27 = vand.u32 2147483648, %v1037_v5  ;;  %vm1043_vm11 = vcmp.eq.f32.partialorder %v1037_v5, 0.0 }
 0x2a7   :  { %v1055_v51 = vadd.f32 0.5, %v1053_v49 }
 0x2a8   :  { %v1056_v50 = vadd.f32 0.5, %v1054_v47 }
 0x2a9   :  { %v1057_v53 = vfloor.f32 %v1055_v51 }
 0x2aa   :  { %v1058_v52 = vfloor.f32 %v1056_v50 }
 0x2ab   :  { %v1059_v55 = vsub.f32 %v1053_v49, %v1057_v53 }
 0x2ac   :  { %v1060_v54 = vsub.f32 %v1054_v47, %v1058_v52 }
 0x2ad   :  { %v1063_v62 = vmul.f32 16.0, %v1059_v55  ;;  %v1065_v63 = vand.u32 2147483647, %v1059_v55  ;;  %v1061_v3 = vmul.f32 8.0, %v1059_v55 }
 0x2ae   :  { %v1064_v60 = vmul.f32 16.0, %v1060_v54  ;;  %v1066_v61 = vand.u32 2147483647, %v1060_v54  ;;  %v1062_v0 = vmul.f32 8.0, %v1060_v54  ;;  %v1864_v14 = vpop.eup %1863 }
 0x2af   :  { %v1067_v4 = vmul.f32 %v1065_v63, %v1063_v62  ;;  %v1866_v17 = vpop.eup %1865  ;;  %v1047_v21 = vmul.f32 %v1864_v14, %v1038_v2 }
 0x2b0   :  { %v1068_v1 = vmul.f32 %v1066_v61, %v1064_v60  ;;  %v1040_v22 = vmul.f32 %v1866_v17, %v1037_v5 }
 0x2b1   :  { %v1069_v8 = vsub.f32 %v1061_v3, %v1067_v4  ;;  %v1049_v26 = vsel %vm1048_vm8, %v1038_v2, %v1047_v21 }
 0x2b2   :  { %v1070_v7 = vsub.f32 %v1062_v0, %v1068_v1  ;;  %v1042_v28 = vsel %vm1041_vm9, %v1037_v5, %v1040_v22  ;;  %v1052_v30 = vsel %vm1050_vm10, %v1051_v24, %v1049_v26 }
 0x2b3   :  { %v1071_v10 = vand.u32 2147483647, %v1069_v8  ;;  %v1045_v32 = vsel %vm1043_vm11, %v1044_v27, %v1042_v28 }
 0x2b4   :  { %v1072_v9 = vand.u32 2147483647, %v1070_v7 }
 0x2b5   :  { %v1073_v12 = vmul.f32 %v1071_v10, %v1069_v8 }
 0x2b6   :  { %v1074_v11 = vmul.f32 %v1072_v9, %v1070_v7 }
 0x2b7   :  { %v1075_v20 = vsub.f32 %v1073_v12, %v1069_v8 }
 0x2b8   :  { %v1076_v16 = vsub.f32 %v1074_v11, %v1070_v7 }
 0x2b9   :  { %v1077_v25 = vmul.f32 0.225, %v1075_v20 }
 0x2ba   :  { %v1078_v23 = vmul.f32 0.225, %v1076_v16 }
 0x2bb   :  { %v1079_v31 = vadd.f32 %v1077_v25, %v1069_v8 }
 0x2bc   :  { %v1080_v29 = vadd.f32 %v1078_v23, %v1070_v7 }
 0x2bd   :  { %v1081_v6 = vmul.f32 %v1079_v31, %v1045_v32 }
 0x2be   :  { %v1082_v35 = vmul.f32 %v1080_v29, %v1052_v30 }
 0x372   :  { %v1611_v13 = vpop.f32.mrb[4].mxu1 }
 0x373   :  { %v1165_v15 = vpop.f32.mrb[5].mxu1 }
 0x374   :  { %v1576_v18 = vpop.f32.mrb[4].mxu0 }
 0x375   :  { %1867 = vrsqrt.f32 %v1576_v18  ;;  %v972_v19 = vpop.f32.mrb[5].mxu0  ;;  %vm1092_vm12 = vcmp.eq.f32.partialorder %v1576_v18, inf  ;;  %v1095_v37 = vand.u32 2147483648, %v1576_v18  ;;  %vm1094_vm13 = vcmp.eq.f32.partialorder %v1576_v18, 0.0 }
 0x376   :  { %1869 = vrsqrt.f32 %v972_v19  ;;  %vm1085_vm14 = vcmp.eq.f32.partialorder %v972_v19, inf  ;;  %v1088_v40 = vand.u32 2147483648, %v972_v19  ;;  %vm1087_vm15 = vcmp.eq.f32.partialorder %v972_v19, 0.0 }
 0x37f   :  { %v1868_v33 = vpop.eup %1867 }
 0x380   :  { %v1870_v34 = vpop.eup %1869  ;;  %v1091_v36 = vmul.f32 %v1868_v33, %v1576_v18 }
 0x381   :  { %v1084_v38 = vmul.f32 %v1870_v34, %v972_v19 }
 0x382   :  { %v1093_v39 = vsel %vm1092_vm12, %v1576_v18, %v1091_v36 }
 0x383   :  { %v1096_v41 = vsel %vm1094_vm13, %v1095_v37, %v1093_v39  ;;  %v1086_v42 = vsel %vm1085_vm14, %v972_v19, %v1084_v38 }
 0x384   :  { %v1098_v43 = vmul.f32 %v1096_v41, %v1082_v35  ;;  %v1089_v44 = vsel %vm1087_vm15, %v1088_v40, %v1086_v42 }
 0x385   :  { %v1097_v46 = vmul.f32 %v1089_v44, %v1081_v6 }
 0x386   :  { %v1171_v47 = vadd.f32 %v1611_v13, %v1098_v43 }
 0x387   :  { %v1166_v48 = vadd.f32 %v1165_v15, %v1097_v46 }
 0x388   :  { %v1183_v49 = vadd.f32 %v1293_v45, %v1171_v47 }
 0x389   :  { %v1182_v50 = vadd.f32 %v1293_v45, %v1166_v48 }
 0x38a   :  { %1186 = vst.msk [vmem:[%s2255_s5 + $0x8] sm:$0xff] %vm1184_vm0, %v1183_v49 }
 0x38b   :  { %1185 = vst.msk [vmem:[%s2255_s5] sm:$0xff] %vm1184_vm0, %v1182_v50 }

</bundles_post_ra>
